<compile_context>
chip_gen: v7x
topology: tpu7x:2x2x1
jax: 0.10.0
libtpu: 0.0.40
codegen_flags: <defaults>
</compile_context>

<pallas_src>
import numpy as np
import jax
import jax.numpy as jnp
from jax import lax
from jax.experimental import pallas as pl
from jax.experimental.pallas import tpu as pltpu


# ---------------------------------------------------------------------------
# Fused forward kernel: one grid step == one tile of TB images.
#
# Data layouts (b = image inside the tile, u/v = image row/col):
#   img rows   : (u % 4) * 7*TB + (u // 4) * TB + b        lanes: v (28)
#   x1  rows   : P half, A*TB + b   (pooled1 row r1 = 2A+P) lanes: c1*10+ci
#   x2  rows   : I*TB + b           (pooled2 row I)          lanes: J*20+co
#   conv weights: (K, 512) where the four 128-lane blocks are the 2x2 pool
#   corners, so the pool is a max over aligned 128-lane slices.
# ---------------------------------------------------------------------------
def _net_kernel(img_ref, wc1_ref, b1_ref, wc2_ref, b2_ref,
                wf1_ref, bf1_ref, wf2_ref, bf2_ref, out_ref):
    f32 = jnp.float32
    bf16 = jnp.bfloat16
    TB = out_ref.shape[0]

    img = img_ref[...]                                     # (28*TB, 28) bf16

    # ---- conv1: 6 shift matmuls per pooled-row parity P; pool corners live
    #      in the 4 x 128-lane weight blocks; then bias + ReLU. -------------
    x1 = []
    for P in range(2):
        prods = []
        for s1 in range(6):                                # row shift = D1 + ki
            g = 2 * P + s1                                 # image row u = 4A + g
            r0 = (g & 3) * (7 * TB) + (g >> 2) * TB        # static, TB-aligned
            prods.append(jnp.dot(img[r0:r0 + 6 * TB, :], wc1_ref[s1],
                                 preferred_element_type=f32))       # (6*TB, 512)
        acc = (prods[0] + prods[1]) + (prods[2] + prods[3]) + (prods[4] + prods[5])
        m = jnp.maximum(jnp.maximum(acc[:, 0:128], acc[:, 128:256]),
                        jnp.maximum(acc[:, 256:384], acc[:, 384:512]))
        x1.append(jnp.maximum(m + b1_ref[...], 0.0))       # (6*TB, 128) f32

    # ---- conv2: 6 shift matmuls (one per pooled1-row shift s); column shifts
    #      and pool corners are folded into the (128,512) weights. ----------
    # TODO(synk): nn.Dropout2d after conv2 is identity (inference semantics).
    prods2 = []
    for s in range(6):
        a0 = (s >> 1) * TB                                 # static, TB-aligned
        lhs = x1[s & 1][a0:a0 + 4 * TB, :].astype(bf16)    # (4*TB, 128)
        prods2.append(jnp.dot(lhs, wc2_ref[s], preferred_element_type=f32))
    acc2 = (prods2[0] + prods2[1]) + (prods2[2] + prods2[3]) + (prods2[4] + prods2[5])
    m2 = jnp.maximum(jnp.maximum(acc2[:, 0:128], acc2[:, 128:256]),
                     jnp.maximum(acc2[:, 256:384], acc2[:, 384:512]))
    x2 = jnp.maximum(m2 + b2_ref[...], 0.0)                # (4*TB, 128) f32

    # ---- fc1: 4 accumulating matmuls over the pooled row index I; ReLU ----
    p3 = [jnp.dot(x2[I * TB:(I + 1) * TB, :].astype(bf16), wf1_ref[I],
                  preferred_element_type=f32) for I in range(4)]
    h = jnp.maximum(bf1_ref[...] + (p3[0] + p3[1]) + (p3[2] + p3[3]), 0.0)  # (TB,128)
    # TODO(synk): F.dropout(x, training=...) is identity (inference semantics).

    # ---- fc2 + softmax (pad lanes carry a -1e30 bias -> exp() == 0) -------
    z = jnp.dot(h.astype(bf16), wf2_ref[...], preferred_element_type=f32) + bf2_ref[...]
    z = z - jnp.max(z, axis=-1, keepdims=True)
    e = jnp.exp(z)
    out_ref[...] = (e / jnp.sum(e, axis=-1, keepdims=True)).astype(out_ref.dtype)


# ---------------------------------------------------------------------------
# One-time host-side repacking of PyTorch-layout parameters.
# ---------------------------------------------------------------------------
def prepare_net_params(params, dtype=jnp.bfloat16):
    w1 = np.asarray(params["conv1_w"], np.float32)         # (10, 1, 5, 5)
    w2 = np.asarray(params["conv2_w"], np.float32)         # (20, 10, 5, 5)
    wfc1 = np.asarray(params["fc1_w"], np.float32)         # (50, 320)
    wfc2 = np.asarray(params["fc2_w"], np.float32)         # (10, 50)

    # conv1: WC1[s1][v, (D1*2+E1)*128 + c1*10 + ci] = w1[ci, 0, s1-D1, v-2c1-E1]
    wc1 = np.zeros((6, 28, 512), np.float32)
    for s1 in range(6):
        for D1 in range(2):
            ki = s1 - D1
            if not 0 <= ki <= 4:
                continue
            for E1 in range(2):
                blk = (D1 * 2 + E1) * 128
                for c1 in range(12):
                    for kj in range(5):
                        v = 2 * c1 + E1 + kj
                        wc1[s1, v, blk + c1 * 10: blk + c1 * 10 + 10] = w1[:, 0, ki, kj]

    # conv2: WC2[s][c1*10+ci, (d2*2+e2)*128 + J*20 + co] = w2[co, ci, s-d2, c1-2J-e2]
    wc2 = np.zeros((6, 128, 512), np.float32)
    for s in range(6):
        for d2 in range(2):
            ki = s - d2
            if not 0 <= ki <= 4:
                continue
            for e2 in range(2):
                blk = (d2 * 2 + e2) * 128
                for J in range(4):
                    for kj in range(5):
                        c1 = 2 * J + e2 + kj
                        wc2[s, c1 * 10: c1 * 10 + 10,
                            blk + J * 20: blk + J * 20 + 20] = w2[:, :, ki, kj].T

    # fc1 (PyTorch flatten order co*16 + I*4 + J): WF1[I][J*20+co, m]
    wf1 = np.zeros((4, 128, 128), np.float32)
    for I in range(4):
        for J in range(4):
            for co in range(20):
                wf1[I, J * 20 + co, :50] = wfc1[:, co * 16 + I * 4 + J]

    # fc2: WF2[m, k] = wfc2[k, m]
    wf2 = np.zeros((128, 128), np.float32)
    wf2[:50, :10] = wfc2.T

    b1t = np.zeros((1, 128), np.float32)
    for c1 in range(12):
        b1t[0, c1 * 10: c1 * 10 + 10] = np.asarray(params["conv1_b"], np.float32)
    b2t = np.zeros((1, 128), np.float32)
    for J in range(4):
        b2t[0, J * 20: J * 20 + 20] = np.asarray(params["conv2_b"], np.float32)
    bf1 = np.zeros((1, 128), np.float32)
    bf1[0, :50] = np.asarray(params["fc1_b"], np.float32)
    bf2 = np.full((1, 128), -1e30, np.float32)              # pad logits -> softmax 0
    bf2[0, :10] = np.asarray(params["fc2_b"], np.float32)

    return {
        "wc1": jnp.asarray(wc1, dtype), "b1": jnp.asarray(b1t),
        "wc2": jnp.asarray(wc2, dtype), "b2": jnp.asarray(b2t),
        "wf1": jnp.asarray(wf1, dtype), "bf1": jnp.asarray(bf1),
        "wf2": jnp.asarray(wf2, dtype), "bf2": jnp.asarray(bf2),
    }


def _rearrange_images(x, TB):
    # (N, 1, 28, 28) -> (nT*28*TB, 28) bf16, rows ordered (tile, u%4, u//4, b).
    # No inflation: HBM traffic is exactly the raw image (in bf16).
    N = x.shape[0]
    assert x.shape[1:] == (1, 28, 28), x.shape
    nT = (N + TB - 1) // TB
    x = jnp.pad(x, ((0, nT * TB - N), (0, 0), (0, 0), (0, 0)))
    t = x.reshape(nT, TB, 7, 4, 28)          # (tile, b, alpha=u//4, beta=u%4, v)
    t = t.transpose(0, 3, 2, 1, 4)           # (tile, beta, alpha, b, v)
    return t.reshape(nT * 28 * TB, 28).astype(jnp.bfloat16)


def net_forward(packed, x, TB=8):
    # TB images per grid step.  TB must be a multiple of 8 (sublane alignment);
    # raise it (e.g. 64-256) for throughput on real batches.
    N = x.shape[0]
    nT = (N + TB - 1) // TB
    img = _rearrange_images(x, TB)

    out = pl.pallas_call(
        _net_kernel,
        out_shape=jax.ShapeDtypeStruct((nT * TB, 128), jnp.float32),
        grid=(nT,),
        in_specs=[
            pl.BlockSpec((28 * TB, 28), lambda n: (n, 0)),      # raw images (tile)
            pl.BlockSpec((6, 28, 512), lambda n: (0, 0, 0)),    # conv1 shift weights
            pl.BlockSpec((1, 128), lambda n: (0, 0)),           # conv1 bias (tiled)
            pl.BlockSpec((6, 128, 512), lambda n: (0, 0, 0)),   # conv2 shift weights
            pl.BlockSpec((1, 128), lambda n: (0, 0)),           # conv2 bias (tiled)
            pl.BlockSpec((4, 128, 128), lambda n: (0, 0, 0)),   # fc1 weights (per I)
            pl.BlockSpec((1, 128), lambda n: (0, 0)),           # fc1 bias
            pl.BlockSpec((128, 128), lambda n: (0, 0)),         # fc2 weight
            pl.BlockSpec((1, 128), lambda n: (0, 0)),           # fc2 bias (pad -1e30)
        ],
        out_specs=pl.BlockSpec((TB, 128), lambda n: (n, 0)),    # lane-dense output
        compiler_params=pltpu.CompilerParams(
            dimension_semantics=("parallel",)),
    )(img, packed["wc1"], packed["b1"], packed["wc2"], packed["b2"],
      packed["wf1"], packed["bf1"], packed["wf2"], packed["bf2"])
    return out[:N, :10]


# ---------------------------------------------------------------------------
# Params + pure-JAX reference (correctness check).
# ---------------------------------------------------------------------------
def init_params(key):
    def uni(k, shape, fan_in):
        b = float(1.0 / (fan_in ** 0.5))
        return jax.random.uniform(k, shape, jnp.float32, -b, b)

    ks = jax.random.split(key, 8)
    return {
        "conv1_w": uni(ks[0], (10, 1, 5, 5), 1 * 25),
        "conv1_b": uni(ks[1], (10,), 1 * 25),
        "conv2_w": uni(ks[2], (20, 10, 5, 5), 10 * 25),
        "conv2_b": uni(ks[3], (20,), 10 * 25),
        "fc1_w": uni(ks[4], (50, 320), 320),
        "fc1_b": uni(ks[5], (50,), 320),
        "fc2_w": uni(ks[6], (10, 50), 50),
        "fc2_b": uni(ks[7], (10,), 50),
    }


def reference_forward(params, x):
    dn1 = lax.conv_dimension_numbers(x.shape, params["conv1_w"].shape,
                                     ("NCHW", "OIHW", "NCHW"))
    y = lax.conv_general_dilated(x, params["conv1_w"], (1, 1), "VALID",
                                 dimension_numbers=dn1)
    y = y + params["conv1_b"][None, :, None, None]
    y = jax.nn.relu(lax.reduce_window(y, -jnp.inf, lax.max,
                                      (1, 1, 2, 2), (1, 1, 2, 2), "VALID"))
    dn2 = lax.conv_dimension_numbers(y.shape, params["conv2_w"].shape,
                                     ("NCHW", "OIHW", "NCHW"))
    y = lax.conv_general_dilated(y, params["conv2_w"], (1, 1), "VALID",
                                 dimension_numbers=dn2)
    y = y + params["conv2_b"][None, :, None, None]
    y = jax.nn.relu(lax.reduce_window(y, -jnp.inf, lax.max,
                                      (1, 1, 2, 2), (1, 1, 2, 2), "VALID"))
    y = y.reshape(y.shape[0], 320)
    y = jax.nn.relu(y @ params["fc1_w"].T + params["fc1_b"])
    y = y @ params["fc2_w"].T + params["fc2_b"]
    return jax.nn.softmax(y, axis=-1)


if __name__ == "__main__":
    key = jax.random.PRNGKey(0)
    pkey, xkey = jax.random.split(key)
    params = init_params(pkey)
    packed = prepare_net_params(params)          # one-time weight repacking

    # fc1 expects 320 = 20*4*4 features -> input is (N, 1, 28, 28).
    # N=10 exercises both a multi-step grid (2 tiles of TB=8) and tail padding.
    x = jax.random.normal(xkey, (10, 1, 28, 28), jnp.float32)

    out = jax.jit(net_forward)(packed, x)
    out = jax.block_until_ready(out)

    ref = reference_forward(params, x)
    assert out.shape == (10, 10)
    err = float(jnp.max(jnp.abs(out - ref)))
    # tolerance accommodates bf16 weights/activations vs. the f32 reference
    assert err < 2e-2, ("max abs prob error too large", err)
    print("KERNEL_OK")
</pallas_src>

<mosaic_0001>
module attributes {stable_mosaic.version = 11 : i64} {
  func.func @_net_kernel(%arg0: i32, %arg1: memref<224x28xbf16, #tpu.memory_space<vmem>>, %arg2: memref<6x28x512xbf16, #tpu.memory_space<vmem>>, %arg3: memref<1x128xf32, #tpu.memory_space<vmem>>, %arg4: memref<6x128x512xbf16, #tpu.memory_space<vmem>>, %arg5: memref<1x128xf32, #tpu.memory_space<vmem>>, %arg6: memref<4x128x128xbf16, #tpu.memory_space<vmem>>, %arg7: memref<1x128xf32, #tpu.memory_space<vmem>>, %arg8: memref<128x128xbf16, #tpu.memory_space<vmem>>, %arg9: memref<1x128xf32, #tpu.memory_space<vmem>>, %arg10: memref<8x128xf32, #tpu.memory_space<vmem>>) attributes {dimension_semantics = [#tpu.dimension_semantics<parallel>], iteration_bounds = array<i64: 2>, scalar_prefetch = 0 : i64, scratch_operands = 0 : i64, tpu.core_type = #tpu.core_type<tc>, window_params = [{transform_indices = @transform_0, window_bounds = array<i64: 224, 28>}, {pipeline_mode = #tpu.pipeline_mode<synchronous>, transform_indices = @transform_1, window_bounds = array<i64: 6, 28, 512>}, {pipeline_mode = #tpu.pipeline_mode<synchronous>, transform_indices = @transform_2, window_bounds = array<i64: 1, 128>}, {pipeline_mode = #tpu.pipeline_mode<synchronous>, transform_indices = @transform_3, window_bounds = array<i64: 6, 128, 512>}, {pipeline_mode = #tpu.pipeline_mode<synchronous>, transform_indices = @transform_4, window_bounds = array<i64: 1, 128>}, {pipeline_mode = #tpu.pipeline_mode<synchronous>, transform_indices = @transform_5, window_bounds = array<i64: 4, 128, 128>}, {pipeline_mode = #tpu.pipeline_mode<synchronous>, transform_indices = @transform_6, window_bounds = array<i64: 1, 128>}, {pipeline_mode = #tpu.pipeline_mode<synchronous>, transform_indices = @transform_7, window_bounds = array<i64: 128, 128>}, {pipeline_mode = #tpu.pipeline_mode<synchronous>, transform_indices = @transform_8, window_bounds = array<i64: 1, 128>}, {transform_indices = @transform_9, window_bounds = array<i64: 8, 128>}]} {
    %c0 = arith.constant 0 : index
    %c0_0 = arith.constant 0 : index
    %0 = vector.load %arg1[%c0, %c0_0] : memref<224x28xbf16, #tpu.memory_space<vmem>>, vector<224x28xbf16>
    %1 = vector.extract_strided_slice %0 {offsets = [0, 0], sizes = [48, 28], strides = [1, 1]} : vector<224x28xbf16> to vector<48x28xbf16>
    %c0_1 = arith.constant 0 : index
    %c0_2 = arith.constant 0 : index
    %c0_3 = arith.constant 0 : index
    %2 = vector.load %arg2[%c0_1, %c0_2, %c0_3] : memref<6x28x512xbf16, #tpu.memory_space<vmem>>, vector<1x28x512xbf16>
    %3 = vector.shape_cast %2 : vector<1x28x512xbf16> to vector<28x512xbf16>
    %cst = arith.constant dense<0.000000e+00> : vector<48x512xf32>
    %4 = tpu.matmul %1, %3, %cst {dimension_numbers = #tpu.dot_dimension_numbers<[1], [0], [0], [1], [0, 0, 1, 1], [], []>} : vector<48x28xbf16>, vector<28x512xbf16>, vector<48x512xf32> -> vector<48x512xf32>
    %5 = vector.extract_strided_slice %0 {offsets = [56, 0], sizes = [48, 28], strides = [1, 1]} : vector<224x28xbf16> to vector<48x28xbf16>
    %c1 = arith.constant 1 : index
    %c0_4 = arith.constant 0 : index
    %c0_5 = arith.constant 0 : index
    %6 = vector.load %arg2[%c1, %c0_4, %c0_5] : memref<6x28x512xbf16, #tpu.memory_space<vmem>>, vector<1x28x512xbf16>
    %7 = vector.shape_cast %6 : vector<1x28x512xbf16> to vector<28x512xbf16>
    %cst_6 = arith.constant dense<0.000000e+00> : vector<48x512xf32>
    %8 = tpu.matmul %5, %7, %cst_6 {dimension_numbers = #tpu.dot_dimension_numbers<[1], [0], [0], [1], [0, 0, 1, 1], [], []>} : vector<48x28xbf16>, vector<28x512xbf16>, vector<48x512xf32> -> vector<48x512xf32>
    %9 = vector.extract_strided_slice %0 {offsets = [112, 0], sizes = [48, 28], strides = [1, 1]} : vector<224x28xbf16> to vector<48x28xbf16>
    %c2 = arith.constant 2 : index
    %c0_7 = arith.constant 0 : index
    %c0_8 = arith.constant 0 : index
    %10 = vector.load %arg2[%c2, %c0_7, %c0_8] : memref<6x28x512xbf16, #tpu.memory_space<vmem>>, vector<1x28x512xbf16>
    %11 = vector.shape_cast %10 : vector<1x28x512xbf16> to vector<28x512xbf16>
    %cst_9 = arith.constant dense<0.000000e+00> : vector<48x512xf32>
    %12 = tpu.matmul %9, %11, %cst_9 {dimension_numbers = #tpu.dot_dimension_numbers<[1], [0], [0], [1], [0, 0, 1, 1], [], []>} : vector<48x28xbf16>, vector<28x512xbf16>, vector<48x512xf32> -> vector<48x512xf32>
    %13 = vector.extract_strided_slice %0 {offsets = [168, 0], sizes = [48, 28], strides = [1, 1]} : vector<224x28xbf16> to vector<48x28xbf16>
    %c3 = arith.constant 3 : index
    %c0_10 = arith.constant 0 : index
    %c0_11 = arith.constant 0 : index
    %14 = vector.load %arg2[%c3, %c0_10, %c0_11] : memref<6x28x512xbf16, #tpu.memory_space<vmem>>, vector<1x28x512xbf16>
    %15 = vector.shape_cast %14 : vector<1x28x512xbf16> to vector<28x512xbf16>
    %cst_12 = arith.constant dense<0.000000e+00> : vector<48x512xf32>
    %16 = tpu.matmul %13, %15, %cst_12 {dimension_numbers = #tpu.dot_dimension_numbers<[1], [0], [0], [1], [0, 0, 1, 1], [], []>} : vector<48x28xbf16>, vector<28x512xbf16>, vector<48x512xf32> -> vector<48x512xf32>
    %17 = vector.extract_strided_slice %0 {offsets = [8, 0], sizes = [48, 28], strides = [1, 1]} : vector<224x28xbf16> to vector<48x28xbf16>
    %c4 = arith.constant 4 : index
    %c0_13 = arith.constant 0 : index
    %c0_14 = arith.constant 0 : index
    %18 = vector.load %arg2[%c4, %c0_13, %c0_14] : memref<6x28x512xbf16, #tpu.memory_space<vmem>>, vector<1x28x512xbf16>
    %19 = vector.shape_cast %18 : vector<1x28x512xbf16> to vector<28x512xbf16>
    %cst_15 = arith.constant dense<0.000000e+00> : vector<48x512xf32>
    %20 = tpu.matmul %17, %19, %cst_15 {dimension_numbers = #tpu.dot_dimension_numbers<[1], [0], [0], [1], [0, 0, 1, 1], [], []>} : vector<48x28xbf16>, vector<28x512xbf16>, vector<48x512xf32> -> vector<48x512xf32>
    %21 = vector.extract_strided_slice %0 {offsets = [64, 0], sizes = [48, 28], strides = [1, 1]} : vector<224x28xbf16> to vector<48x28xbf16>
    %c5 = arith.constant 5 : index
    %c0_16 = arith.constant 0 : index
    %c0_17 = arith.constant 0 : index
    %22 = vector.load %arg2[%c5, %c0_16, %c0_17] : memref<6x28x512xbf16, #tpu.memory_space<vmem>>, vector<1x28x512xbf16>
    %23 = vector.shape_cast %22 : vector<1x28x512xbf16> to vector<28x512xbf16>
    %cst_18 = arith.constant dense<0.000000e+00> : vector<48x512xf32>
    %24 = tpu.matmul %21, %23, %cst_18 {dimension_numbers = #tpu.dot_dimension_numbers<[1], [0], [0], [1], [0, 0, 1, 1], [], []>} : vector<48x28xbf16>, vector<28x512xbf16>, vector<48x512xf32> -> vector<48x512xf32>
    %25 = arith.addf %4, %8 : vector<48x512xf32>
    %26 = arith.addf %12, %16 : vector<48x512xf32>
    %27 = arith.addf %25, %26 : vector<48x512xf32>
    %28 = arith.addf %20, %24 : vector<48x512xf32>
    %29 = arith.addf %27, %28 : vector<48x512xf32>
    %30 = vector.extract_strided_slice %29 {offsets = [0, 0], sizes = [48, 128], strides = [1, 1]} : vector<48x512xf32> to vector<48x128xf32>
    %31 = vector.extract_strided_slice %29 {offsets = [0, 128], sizes = [48, 128], strides = [1, 1]} : vector<48x512xf32> to vector<48x128xf32>
    %32 = arith.maximumf %30, %31 : vector<48x128xf32>
    %33 = vector.extract_strided_slice %29 {offsets = [0, 256], sizes = [48, 128], strides = [1, 1]} : vector<48x512xf32> to vector<48x128xf32>
    %34 = vector.extract_strided_slice %29 {offsets = [0, 384], sizes = [48, 128], strides = [1, 1]} : vector<48x512xf32> to vector<48x128xf32>
    %35 = arith.maximumf %33, %34 : vector<48x128xf32>
    %36 = arith.maximumf %32, %35 : vector<48x128xf32>
    %c0_19 = arith.constant 0 : index
    %c0_20 = arith.constant 0 : index
    %37 = vector.load %arg3[%c0_19, %c0_20] : memref<1x128xf32, #tpu.memory_space<vmem>>, vector<1x128xf32>
    %38 = vector.broadcast %37 : vector<1x128xf32> to vector<48x128xf32>
    %39 = arith.addf %36, %38 : vector<48x128xf32>
    %cst_21 = arith.constant 0.000000e+00 : f32
    %40 = vector.broadcast %cst_21 : f32 to vector<48x128xf32>
    %41 = arith.maximumf %39, %40 : vector<48x128xf32>
    %42 = vector.extract_strided_slice %0 {offsets = [112, 0], sizes = [48, 28], strides = [1, 1]} : vector<224x28xbf16> to vector<48x28xbf16>
    %c0_22 = arith.constant 0 : index
    %c0_23 = arith.constant 0 : index
    %c0_24 = arith.constant 0 : index
    %43 = vector.load %arg2[%c0_22, %c0_23, %c0_24] : memref<6x28x512xbf16, #tpu.memory_space<vmem>>, vector<1x28x512xbf16>
    %44 = vector.shape_cast %43 : vector<1x28x512xbf16> to vector<28x512xbf16>
    %cst_25 = arith.constant dense<0.000000e+00> : vector<48x512xf32>
    %45 = tpu.matmul %42, %44, %cst_25 {dimension_numbers = #tpu.dot_dimension_numbers<[1], [0], [0], [1], [0, 0, 1, 1], [], []>} : vector<48x28xbf16>, vector<28x512xbf16>, vector<48x512xf32> -> vector<48x512xf32>
    %46 = vector.extract_strided_slice %0 {offsets = [168, 0], sizes = [48, 28], strides = [1, 1]} : vector<224x28xbf16> to vector<48x28xbf16>
    %c1_26 = arith.constant 1 : index
    %c0_27 = arith.constant 0 : index
    %c0_28 = arith.constant 0 : index
    %47 = vector.load %arg2[%c1_26, %c0_27, %c0_28] : memref<6x28x512xbf16, #tpu.memory_space<vmem>>, vector<1x28x512xbf16>
    %48 = vector.shape_cast %47 : vector<1x28x512xbf16> to vector<28x512xbf16>
    %cst_29 = arith.constant dense<0.000000e+00> : vector<48x512xf32>
    %49 = tpu.matmul %46, %48, %cst_29 {dimension_numbers = #tpu.dot_dimension_numbers<[1], [0], [0], [1], [0, 0, 1, 1], [], []>} : vector<48x28xbf16>, vector<28x512xbf16>, vector<48x512xf32> -> vector<48x512xf32>
    %50 = vector.extract_strided_slice %0 {offsets = [8, 0], sizes = [48, 28], strides = [1, 1]} : vector<224x28xbf16> to vector<48x28xbf16>
    %c2_30 = arith.constant 2 : index
    %c0_31 = arith.constant 0 : index
    %c0_32 = arith.constant 0 : index
    %51 = vector.load %arg2[%c2_30, %c0_31, %c0_32] : memref<6x28x512xbf16, #tpu.memory_space<vmem>>, vector<1x28x512xbf16>
    %52 = vector.shape_cast %51 : vector<1x28x512xbf16> to vector<28x512xbf16>
    %cst_33 = arith.constant dense<0.000000e+00> : vector<48x512xf32>
    %53 = tpu.matmul %50, %52, %cst_33 {dimension_numbers = #tpu.dot_dimension_numbers<[1], [0], [0], [1], [0, 0, 1, 1], [], []>} : vector<48x28xbf16>, vector<28x512xbf16>, vector<48x512xf32> -> vector<48x512xf32>
    %54 = vector.extract_strided_slice %0 {offsets = [64, 0], sizes = [48, 28], strides = [1, 1]} : vector<224x28xbf16> to vector<48x28xbf16>
    %c3_34 = arith.constant 3 : index
    %c0_35 = arith.constant 0 : index
    %c0_36 = arith.constant 0 : index
    %55 = vector.load %arg2[%c3_34, %c0_35, %c0_36] : memref<6x28x512xbf16, #tpu.memory_space<vmem>>, vector<1x28x512xbf16>
    %56 = vector.shape_cast %55 : vector<1x28x512xbf16> to vector<28x512xbf16>
    %cst_37 = arith.constant dense<0.000000e+00> : vector<48x512xf32>
    %57 = tpu.matmul %54, %56, %cst_37 {dimension_numbers = #tpu.dot_dimension_numbers<[1], [0], [0], [1], [0, 0, 1, 1], [], []>} : vector<48x28xbf16>, vector<28x512xbf16>, vector<48x512xf32> -> vector<48x512xf32>
    %58 = vector.extract_strided_slice %0 {offsets = [120, 0], sizes = [48, 28], strides = [1, 1]} : vector<224x28xbf16> to vector<48x28xbf16>
    %c4_38 = arith.constant 4 : index
    %c0_39 = arith.constant 0 : index
    %c0_40 = arith.constant 0 : index
    %59 = vector.load %arg2[%c4_38, %c0_39, %c0_40] : memref<6x28x512xbf16, #tpu.memory_space<vmem>>, vector<1x28x512xbf16>
    %60 = vector.shape_cast %59 : vector<1x28x512xbf16> to vector<28x512xbf16>
    %cst_41 = arith.constant dense<0.000000e+00> : vector<48x512xf32>
    %61 = tpu.matmul %58, %60, %cst_41 {dimension_numbers = #tpu.dot_dimension_numbers<[1], [0], [0], [1], [0, 0, 1, 1], [], []>} : vector<48x28xbf16>, vector<28x512xbf16>, vector<48x512xf32> -> vector<48x512xf32>
    %62 = vector.extract_strided_slice %0 {offsets = [176, 0], sizes = [48, 28], strides = [1, 1]} : vector<224x28xbf16> to vector<48x28xbf16>
    %c5_42 = arith.constant 5 : index
    %c0_43 = arith.constant 0 : index
    %c0_44 = arith.constant 0 : index
    %63 = vector.load %arg2[%c5_42, %c0_43, %c0_44] : memref<6x28x512xbf16, #tpu.memory_space<vmem>>, vector<1x28x512xbf16>
    %64 = vector.shape_cast %63 : vector<1x28x512xbf16> to vector<28x512xbf16>
    %cst_45 = arith.constant dense<0.000000e+00> : vector<48x512xf32>
    %65 = tpu.matmul %62, %64, %cst_45 {dimension_numbers = #tpu.dot_dimension_numbers<[1], [0], [0], [1], [0, 0, 1, 1], [], []>} : vector<48x28xbf16>, vector<28x512xbf16>, vector<48x512xf32> -> vector<48x512xf32>
    %66 = arith.addf %45, %49 : vector<48x512xf32>
    %67 = arith.addf %53, %57 : vector<48x512xf32>
    %68 = arith.addf %66, %67 : vector<48x512xf32>
    %69 = arith.addf %61, %65 : vector<48x512xf32>
    %70 = arith.addf %68, %69 : vector<48x512xf32>
    %71 = vector.extract_strided_slice %70 {offsets = [0, 0], sizes = [48, 128], strides = [1, 1]} : vector<48x512xf32> to vector<48x128xf32>
    %72 = vector.extract_strided_slice %70 {offsets = [0, 128], sizes = [48, 128], strides = [1, 1]} : vector<48x512xf32> to vector<48x128xf32>
    %73 = arith.maximumf %71, %72 : vector<48x128xf32>
    %74 = vector.extract_strided_slice %70 {offsets = [0, 256], sizes = [48, 128], strides = [1, 1]} : vector<48x512xf32> to vector<48x128xf32>
    %75 = vector.extract_strided_slice %70 {offsets = [0, 384], sizes = [48, 128], strides = [1, 1]} : vector<48x512xf32> to vector<48x128xf32>
    %76 = arith.maximumf %74, %75 : vector<48x128xf32>
    %77 = arith.maximumf %73, %76 : vector<48x128xf32>
    %c0_46 = arith.constant 0 : index
    %c0_47 = arith.constant 0 : index
    %78 = vector.load %arg3[%c0_46, %c0_47] : memref<1x128xf32, #tpu.memory_space<vmem>>, vector<1x128xf32>
    %79 = vector.broadcast %78 : vector<1x128xf32> to vector<48x128xf32>
    %80 = arith.addf %77, %79 : vector<48x128xf32>
    %cst_48 = arith.constant 0.000000e+00 : f32
    %81 = vector.broadcast %cst_48 : f32 to vector<48x128xf32>
    %82 = arith.maximumf %80, %81 : vector<48x128xf32>
    %83 = vector.extract_strided_slice %41 {offsets = [0, 0], sizes = [32, 128], strides = [1, 1]} : vector<48x128xf32> to vector<32x128xf32>
    %84 = arith.truncf %83 : vector<32x128xf32> to vector<32x128xbf16>
    %c0_49 = arith.constant 0 : index
    %c0_50 = arith.constant 0 : index
    %c0_51 = arith.constant 0 : index
    %85 = vector.load %arg4[%c0_49, %c0_50, %c0_51] : memref<6x128x512xbf16, #tpu.memory_space<vmem>>, vector<1x128x512xbf16>
    %86 = vector.shape_cast %85 : vector<1x128x512xbf16> to vector<128x512xbf16>
    %cst_52 = arith.constant dense<0.000000e+00> : vector<32x512xf32>
    %87 = tpu.matmul %84, %86, %cst_52 {dimension_numbers = #tpu.dot_dimension_numbers<[1], [0], [0], [1], [0, 0, 1, 1], [], []>} : vector<32x128xbf16>, vector<128x512xbf16>, vector<32x512xf32> -> vector<32x512xf32>
    %88 = vector.extract_strided_slice %82 {offsets = [0, 0], sizes = [32, 128], strides = [1, 1]} : vector<48x128xf32> to vector<32x128xf32>
    %89 = arith.truncf %88 : vector<32x128xf32> to vector<32x128xbf16>
    %c1_53 = arith.constant 1 : index
    %c0_54 = arith.constant 0 : index
    %c0_55 = arith.constant 0 : index
    %90 = vector.load %arg4[%c1_53, %c0_54, %c0_55] : memref<6x128x512xbf16, #tpu.memory_space<vmem>>, vector<1x128x512xbf16>
    %91 = vector.shape_cast %90 : vector<1x128x512xbf16> to vector<128x512xbf16>
    %cst_56 = arith.constant dense<0.000000e+00> : vector<32x512xf32>
    %92 = tpu.matmul %89, %91, %cst_56 {dimension_numbers = #tpu.dot_dimension_numbers<[1], [0], [0], [1], [0, 0, 1, 1], [], []>} : vector<32x128xbf16>, vector<128x512xbf16>, vector<32x512xf32> -> vector<32x512xf32>
    %93 = vector.extract_strided_slice %41 {offsets = [8, 0], sizes = [32, 128], strides = [1, 1]} : vector<48x128xf32> to vector<32x128xf32>
    %94 = arith.truncf %93 : vector<32x128xf32> to vector<32x128xbf16>
    %c2_57 = arith.constant 2 : index
    %c0_58 = arith.constant 0 : index
    %c0_59 = arith.constant 0 : index
    %95 = vector.load %arg4[%c2_57, %c0_58, %c0_59] : memref<6x128x512xbf16, #tpu.memory_space<vmem>>, vector<1x128x512xbf16>
    %96 = vector.shape_cast %95 : vector<1x128x512xbf16> to vector<128x512xbf16>
    %cst_60 = arith.constant dense<0.000000e+00> : vector<32x512xf32>
    %97 = tpu.matmul %94, %96, %cst_60 {dimension_numbers = #tpu.dot_dimension_numbers<[1], [0], [0], [1], [0, 0, 1, 1], [], []>} : vector<32x128xbf16>, vector<128x512xbf16>, vector<32x512xf32> -> vector<32x512xf32>
    %98 = vector.extract_strided_slice %82 {offsets = [8, 0], sizes = [32, 128], strides = [1, 1]} : vector<48x128xf32> to vector<32x128xf32>
    %99 = arith.truncf %98 : vector<32x128xf32> to vector<32x128xbf16>
    %c3_61 = arith.constant 3 : index
    %c0_62 = arith.constant 0 : index
    %c0_63 = arith.constant 0 : index
    %100 = vector.load %arg4[%c3_61, %c0_62, %c0_63] : memref<6x128x512xbf16, #tpu.memory_space<vmem>>, vector<1x128x512xbf16>
    %101 = vector.shape_cast %100 : vector<1x128x512xbf16> to vector<128x512xbf16>
    %cst_64 = arith.constant dense<0.000000e+00> : vector<32x512xf32>
    %102 = tpu.matmul %99, %101, %cst_64 {dimension_numbers = #tpu.dot_dimension_numbers<[1], [0], [0], [1], [0, 0, 1, 1], [], []>} : vector<32x128xbf16>, vector<128x512xbf16>, vector<32x512xf32> -> vector<32x512xf32>
    %103 = vector.extract_strided_slice %41 {offsets = [16, 0], sizes = [32, 128], strides = [1, 1]} : vector<48x128xf32> to vector<32x128xf32>
    %104 = arith.truncf %103 : vector<32x128xf32> to vector<32x128xbf16>
    %c4_65 = arith.constant 4 : index
    %c0_66 = arith.constant 0 : index
    %c0_67 = arith.constant 0 : index
    %105 = vector.load %arg4[%c4_65, %c0_66, %c0_67] : memref<6x128x512xbf16, #tpu.memory_space<vmem>>, vector<1x128x512xbf16>
    %106 = vector.shape_cast %105 : vector<1x128x512xbf16> to vector<128x512xbf16>
    %cst_68 = arith.constant dense<0.000000e+00> : vector<32x512xf32>
    %107 = tpu.matmul %104, %106, %cst_68 {dimension_numbers = #tpu.dot_dimension_numbers<[1], [0], [0], [1], [0, 0, 1, 1], [], []>} : vector<32x128xbf16>, vector<128x512xbf16>, vector<32x512xf32> -> vector<32x512xf32>
    %108 = vector.extract_strided_slice %82 {offsets = [16, 0], sizes = [32, 128], strides = [1, 1]} : vector<48x128xf32> to vector<32x128xf32>
    %109 = arith.truncf %108 : vector<32x128xf32> to vector<32x128xbf16>
    %c5_69 = arith.constant 5 : index
    %c0_70 = arith.constant 0 : index
    %c0_71 = arith.constant 0 : index
    %110 = vector.load %arg4[%c5_69, %c0_70, %c0_71] : memref<6x128x512xbf16, #tpu.memory_space<vmem>>, vector<1x128x512xbf16>
    %111 = vector.shape_cast %110 : vector<1x128x512xbf16> to vector<128x512xbf16>
    %cst_72 = arith.constant dense<0.000000e+00> : vector<32x512xf32>
    %112 = tpu.matmul %109, %111, %cst_72 {dimension_numbers = #tpu.dot_dimension_numbers<[1], [0], [0], [1], [0, 0, 1, 1], [], []>} : vector<32x128xbf16>, vector<128x512xbf16>, vector<32x512xf32> -> vector<32x512xf32>
    %113 = arith.addf %87, %92 : vector<32x512xf32>
    %114 = arith.addf %97, %102 : vector<32x512xf32>
    %115 = arith.addf %113, %114 : vector<32x512xf32>
    %116 = arith.addf %107, %112 : vector<32x512xf32>
    %117 = arith.addf %115, %116 : vector<32x512xf32>
    %118 = vector.extract_strided_slice %117 {offsets = [0, 0], sizes = [32, 128], strides = [1, 1]} : vector<32x512xf32> to vector<32x128xf32>
    %119 = vector.extract_strided_slice %117 {offsets = [0, 128], sizes = [32, 128], strides = [1, 1]} : vector<32x512xf32> to vector<32x128xf32>
    %120 = arith.maximumf %118, %119 : vector<32x128xf32>
    %121 = vector.extract_strided_slice %117 {offsets = [0, 256], sizes = [32, 128], strides = [1, 1]} : vector<32x512xf32> to vector<32x128xf32>
    %122 = vector.extract_strided_slice %117 {offsets = [0, 384], sizes = [32, 128], strides = [1, 1]} : vector<32x512xf32> to vector<32x128xf32>
    %123 = arith.maximumf %121, %122 : vector<32x128xf32>
    %124 = arith.maximumf %120, %123 : vector<32x128xf32>
    %c0_73 = arith.constant 0 : index
    %c0_74 = arith.constant 0 : index
    %125 = vector.load %arg5[%c0_73, %c0_74] : memref<1x128xf32, #tpu.memory_space<vmem>>, vector<1x128xf32>
    %126 = vector.broadcast %125 : vector<1x128xf32> to vector<32x128xf32>
    %127 = arith.addf %124, %126 : vector<32x128xf32>
    %cst_75 = arith.constant 0.000000e+00 : f32
    %128 = vector.broadcast %cst_75 : f32 to vector<32x128xf32>
    %129 = arith.maximumf %127, %128 : vector<32x128xf32>
    %130 = vector.extract_strided_slice %129 {offsets = [0, 0], sizes = [8, 128], strides = [1, 1]} : vector<32x128xf32> to vector<8x128xf32>
    %131 = arith.truncf %130 : vector<8x128xf32> to vector<8x128xbf16>
    %c0_76 = arith.constant 0 : index
    %c0_77 = arith.constant 0 : index
    %c0_78 = arith.constant 0 : index
    %132 = vector.load %arg6[%c0_76, %c0_77, %c0_78] : memref<4x128x128xbf16, #tpu.memory_space<vmem>>, vector<1x128x128xbf16>
    %133 = vector.shape_cast %132 : vector<1x128x128xbf16> to vector<128x128xbf16>
    %cst_79 = arith.constant dense<0.000000e+00> : vector<8x128xf32>
    %134 = tpu.matmul %131, %133, %cst_79 {dimension_numbers = #tpu.dot_dimension_numbers<[1], [0], [0], [1], [0, 0, 1, 1], [], []>} : vector<8x128xbf16>, vector<128x128xbf16>, vector<8x128xf32> -> vector<8x128xf32>
    %135 = vector.extract_strided_slice %129 {offsets = [8, 0], sizes = [8, 128], strides = [1, 1]} : vector<32x128xf32> to vector<8x128xf32>
    %136 = arith.truncf %135 : vector<8x128xf32> to vector<8x128xbf16>
    %c1_80 = arith.constant 1 : index
    %c0_81 = arith.constant 0 : index
    %c0_82 = arith.constant 0 : index
    %137 = vector.load %arg6[%c1_80, %c0_81, %c0_82] : memref<4x128x128xbf16, #tpu.memory_space<vmem>>, vector<1x128x128xbf16>
    %138 = vector.shape_cast %137 : vector<1x128x128xbf16> to vector<128x128xbf16>
    %cst_83 = arith.constant dense<0.000000e+00> : vector<8x128xf32>
    %139 = tpu.matmul %136, %138, %cst_83 {dimension_numbers = #tpu.dot_dimension_numbers<[1], [0], [0], [1], [0, 0, 1, 1], [], []>} : vector<8x128xbf16>, vector<128x128xbf16>, vector<8x128xf32> -> vector<8x128xf32>
    %140 = vector.extract_strided_slice %129 {offsets = [16, 0], sizes = [8, 128], strides = [1, 1]} : vector<32x128xf32> to vector<8x128xf32>
    %141 = arith.truncf %140 : vector<8x128xf32> to vector<8x128xbf16>
    %c2_84 = arith.constant 2 : index
    %c0_85 = arith.constant 0 : index
    %c0_86 = arith.constant 0 : index
    %142 = vector.load %arg6[%c2_84, %c0_85, %c0_86] : memref<4x128x128xbf16, #tpu.memory_space<vmem>>, vector<1x128x128xbf16>
    %143 = vector.shape_cast %142 : vector<1x128x128xbf16> to vector<128x128xbf16>
    %cst_87 = arith.constant dense<0.000000e+00> : vector<8x128xf32>
    %144 = tpu.matmul %141, %143, %cst_87 {dimension_numbers = #tpu.dot_dimension_numbers<[1], [0], [0], [1], [0, 0, 1, 1], [], []>} : vector<8x128xbf16>, vector<128x128xbf16>, vector<8x128xf32> -> vector<8x128xf32>
    %145 = vector.extract_strided_slice %129 {offsets = [24, 0], sizes = [8, 128], strides = [1, 1]} : vector<32x128xf32> to vector<8x128xf32>
    %146 = arith.truncf %145 : vector<8x128xf32> to vector<8x128xbf16>
    %c3_88 = arith.constant 3 : index
    %c0_89 = arith.constant 0 : index
    %c0_90 = arith.constant 0 : index
    %147 = vector.load %arg6[%c3_88, %c0_89, %c0_90] : memref<4x128x128xbf16, #tpu.memory_space<vmem>>, vector<1x128x128xbf16>
    %148 = vector.shape_cast %147 : vector<1x128x128xbf16> to vector<128x128xbf16>
    %cst_91 = arith.constant dense<0.000000e+00> : vector<8x128xf32>
    %149 = tpu.matmul %146, %148, %cst_91 {dimension_numbers = #tpu.dot_dimension_numbers<[1], [0], [0], [1], [0, 0, 1, 1], [], []>} : vector<8x128xbf16>, vector<128x128xbf16>, vector<8x128xf32> -> vector<8x128xf32>
    %c0_92 = arith.constant 0 : index
    %c0_93 = arith.constant 0 : index
    %150 = vector.load %arg7[%c0_92, %c0_93] : memref<1x128xf32, #tpu.memory_space<vmem>>, vector<1x128xf32>
    %151 = arith.addf %134, %139 : vector<8x128xf32>
    %152 = vector.broadcast %150 : vector<1x128xf32> to vector<8x128xf32>
    %153 = arith.addf %152, %151 : vector<8x128xf32>
    %154 = arith.addf %144, %149 : vector<8x128xf32>
    %155 = arith.addf %153, %154 : vector<8x128xf32>
    %cst_94 = arith.constant 0.000000e+00 : f32
    %156 = vector.broadcast %cst_94 : f32 to vector<8x128xf32>
    %157 = arith.maximumf %155, %156 : vector<8x128xf32>
    %158 = arith.truncf %157 : vector<8x128xf32> to vector<8x128xbf16>
    %c0_95 = arith.constant 0 : index
    %c0_96 = arith.constant 0 : index
    %159 = vector.load %arg8[%c0_95, %c0_96] : memref<128x128xbf16, #tpu.memory_space<vmem>>, vector<128x128xbf16>
    %cst_97 = arith.constant dense<0.000000e+00> : vector<8x128xf32>
    %160 = tpu.matmul %158, %159, %cst_97 {dimension_numbers = #tpu.dot_dimension_numbers<[1], [0], [0], [1], [0, 0, 1, 1], [], []>} : vector<8x128xbf16>, vector<128x128xbf16>, vector<8x128xf32> -> vector<8x128xf32>
    %c0_98 = arith.constant 0 : index
    %c0_99 = arith.constant 0 : index
    %161 = vector.load %arg9[%c0_98, %c0_99] : memref<1x128xf32, #tpu.memory_space<vmem>>, vector<1x128xf32>
    %162 = vector.broadcast %161 : vector<1x128xf32> to vector<8x128xf32>
    %163 = arith.addf %160, %162 : vector<8x128xf32>
    %cst_100 = arith.constant dense<0xFF800000> : vector<8xf32>
    %164 = vector.multi_reduction <maximumf>, %163, %cst_100 [1] : vector<8x128xf32> to vector<8xf32>
    %165 = vector.shape_cast %164 : vector<8xf32> to vector<8x1xf32>
    %166 = vector.broadcast %165 : vector<8x1xf32> to vector<8x128xf32>
    %167 = arith.subf %163, %166 : vector<8x128xf32>
    %168 = math.exp %167 : vector<8x128xf32>
    %cst_101 = arith.constant dense<0.000000e+00> : vector<8xf32>
    %169 = vector.multi_reduction <add>, %168, %cst_101 [1] : vector<8x128xf32> to vector<8xf32>
    %170 = vector.shape_cast %169 : vector<8xf32> to vector<8x1xf32>
    %171 = vector.broadcast %170 : vector<8x1xf32> to vector<8x128xf32>
    %172 = arith.divf %168, %171 : vector<8x128xf32>
    %c0_102 = arith.constant 0 : index
    %c0_103 = arith.constant 0 : index
    %173 = vector.load %arg10[%c0_102, %c0_103] : memref<8x128xf32, #tpu.memory_space<vmem>>, vector<8x128xf32>
    tpu.vector_store %arg10[%c0_102, %c0_103], %172 {strides = array<i32>} : memref<8x128xf32, #tpu.memory_space<vmem>>, vector<8x128xf32>,
    return
  }
  func.func @transform_0(%arg0: i32) -> (i32, i32) {
    %c0_i32 = arith.constant 0 : i32
    %c0_i32_0 = arith.constant 0 : i32
    return %arg0, %c0_i32 : i32, i32
  }
  func.func @transform_1(%arg0: i32) -> (i32, i32, i32) {
    %c0_i32 = arith.constant 0 : i32
    %c0_i32_0 = arith.constant 0 : i32
    %c0_i32_1 = arith.constant 0 : i32
    %c0_i32_2 = arith.constant 0 : i32
    return %c0_i32, %c0_i32_0, %c0_i32_1 : i32, i32, i32
  }
  func.func @transform_2(%arg0: i32) -> (i32, i32) {
    %c0_i32 = arith.constant 0 : i32
    %c0_i32_0 = arith.constant 0 : i32
    %c0_i32_1 = arith.constant 0 : i32
    return %c0_i32, %c0_i32_0 : i32, i32
  }
  func.func @transform_3(%arg0: i32) -> (i32, i32, i32) {
    %c0_i32 = arith.constant 0 : i32
    %c0_i32_0 = arith.constant 0 : i32
    %c0_i32_1 = arith.constant 0 : i32
    %c0_i32_2 = arith.constant 0 : i32
    return %c0_i32, %c0_i32_0, %c0_i32_1 : i32, i32, i32
  }
  func.func @transform_4(%arg0: i32) -> (i32, i32) {
    %c0_i32 = arith.constant 0 : i32
    %c0_i32_0 = arith.constant 0 : i32
    %c0_i32_1 = arith.constant 0 : i32
    return %c0_i32, %c0_i32_0 : i32, i32
  }
  func.func @transform_5(%arg0: i32) -> (i32, i32, i32) {
    %c0_i32 = arith.constant 0 : i32
    %c0_i32_0 = arith.constant 0 : i32
    %c0_i32_1 = arith.constant 0 : i32
    %c0_i32_2 = arith.constant 0 : i32
    return %c0_i32, %c0_i32_0, %c0_i32_1 : i32, i32, i32
  }
  func.func @transform_6(%arg0: i32) -> (i32, i32) {
    %c0_i32 = arith.constant 0 : i32
    %c0_i32_0 = arith.constant 0 : i32
    %c0_i32_1 = arith.constant 0 : i32
    return %c0_i32, %c0_i32_0 : i32, i32
  }
  func.func @transform_7(%arg0: i32) -> (i32, i32) {
    %c0_i32 = arith.constant 0 : i32
    %c0_i32_0 = arith.constant 0 : i32
    %c0_i32_1 = arith.constant 0 : i32
    return %c0_i32, %c0_i32_0 : i32, i32
  }
  func.func @transform_8(%arg0: i32) -> (i32, i32) {
    %c0_i32 = arith.constant 0 : i32
    %c0_i32_0 = arith.constant 0 : i32
    %c0_i32_1 = arith.constant 0 : i32
    return %c0_i32, %c0_i32_0 : i32, i32
  }
  func.func @transform_9(%arg0: i32) -> (i32, i32) {
    %c0_i32 = arith.constant 0 : i32
    %c0_i32_0 = arith.constant 0 : i32
    return %arg0, %c0_i32 : i32, i32
  }
}

</mosaic_0001>

<bundles_post_ra>
// kernel: net_forward.1
= control target key start
LH: loop header
LB: loop body
LE: loop exit
PB: predicated region body
PF: predicated region fallthrough
CT: control target
= control target key end

     0   :  { %14 = vsyncpa [#allocation3], 0  ;;  %s8427_s0 = inlined_call_operand.vmem [shape: bf16[448,28], index: 0, kind: input, shape index: {}]   ;;  %s8428_s1 = inlined_call_operand.vmem [shape: bf16[6,28,512], index: 1, kind: input, shape index: {}]   ;;  %s8429_s2 = inlined_call_operand.vmem [shape: f32[1,128], index: 2, kind: input, shape index: {}]   ;;  %s8430_s3 = inlined_call_operand.vmem [shape: bf16[6,128,512], index: 3, kind: input, shape index: {}]   ;;  %s8431_s4 = inlined_call_operand.vmem [shape: f32[1,128], index: 4, kind: input, shape index: {}]   ;;  %s8432_s5 = inlined_call_operand.hbm [shape: bf16[4,128,128], index: 5, kind: input, shape index: {}]   ;;  %s8433_s6 = inlined_call_operand.vmem [shape: f32[1,128], index: 6, kind: input, shape index: {}]   ;;  %s8434_s7 = inlined_call_operand.vmem [shape: bf16[128,128], index: 7, kind: input, shape index: {}]   ;;  %s8435_s8 = inlined_call_operand.vmem [shape: f32[1,128], index: 8, kind: input, shape index: {}]   ;;  %s8436_s9 = inlined_call_operand.hbm [shape: f32[16,128], index: 9, kind: output, shape index: {}]  }
   0x1   :  { %15 = vsyncpa [#allocation4], 0 }
   0x2   :  { %17 = vsyncpa [#allocation4 + $0x1], 0  ;;  %s6787_s30 = smov 0   ;;  %s6789_s10 = smov 0  }
   0x3   :  { %s6791_s11 = smov 0   ;;  %s6793_s12 = smov 0  }
   0x4 LB: > { %s6808_s13 = sadd.s32 4294967295, %s6728_s12   ;;  %s5049_s14 = sadd.s32 4294967294, %s6728_s12   ;;  %s6728_s12 = sphi %s6793_s12, %s8461_s12   ;;  %s6724_s11 = sphi %s6791_s11, %s8460_s11   ;;  %s6720_s10 = sphi %s6789_s10, %s8459_s10   ;;  %s6716_s30 = sphi %s6787_s30, %s8458_s30  }
   0x5   : > { %s6812_s15 = sadd.s32 1, %s6728_s12   ;;  %s224_s16 = sadd.s32 1, %s6724_s11 }
   0x6   : > { %s221_s17 = ssub.s32 %s6728_s12, %s6812_s15  ;;  %p234_p0 = scmp.ne.s32.totalorder %s6724_s11, %s6720_s10 }
   0x7   : > { %p222_p1 = scmp.eq.s32.totalorder %s221_s17, 0  ;;  %p235_p2 = scmp.eq.s32.totalorder %s6808_s13, 1 }
   0x8   : > { %p240_p3 = scmp.ne.s32.totalorder %s6720_s10, %s6716_s30  ;;  %p241_p4 = scmp.eq.s32.totalorder %s5049_s14, 1 }
   0x9   : > { %s6823_s18 = scalar_select %p222_p1, %s6724_s11, %s224_s16  }
   0xa   : > { %p6825_p5 = por %p235_p2, %p234_p0  ;;  %p6829_p6 = por %p241_p4, %p240_p3 }
   0xb   : > { %p5050_p7 = scmp.ge.s32.totalorder %s6728_s12, 1  ;;  %p248_p8 = scmp.lt.s32.totalorder %s6728_s12, 3 }
   0xc   : > { %s8443_s19 = scalar_select %p6825_p5, 1, 0 }
   0xd   : > { %s8444_s20 = scalar_select %p6829_p6, 1, 0 }
   0xe   : > { %p8437_p9 = scmp.eq.s32.totalorder %s6808_s13, 0  ;;  %p6836_p10 = pnand %p5050_p7, %p248_p8 }
   0xf   : > { %s6730_s22 = smov [#allocation2]   ;;  %s6634_s27 = scalar_lea.hbm %s8432_s5, 4096 }
  0x10   : > { %s8445_s21 = scalar_select %p6836_p10, 1, 0 }
  0x11   : > { %s272_s23 = sshll.u32 %s6730_s22, 4  ;;  %p6153_p11 = pneg %p6836_p10  ;;  %s273_s23 = int_to_ptr.vmem [resolvable:$true] %s272_s23 }
  0x12   : > { %p6635_p13 = scmp.ne.s32.totalorder %s8432_s5, %s6634_s27  ;;  %p6641_p3 = scmp.lt.u32.totalorder %s6634_s27, %s8432_s5 }
  0x13   : > { %p6844_p12 = pnand %p8437_p9, %p6153_p11 }
  0x15   : > { %p6636_p0 = pneg %p6844_p12 }
  0x17   : > { %p6637_p1 = pnand %p6636_p0, %p6635_p13 }
  0x19   : > { %p6638_p2 = pneg %p6637_p1 }
  0x1b   : > { %p6643_p4 = pnand %p6641_p3, %p6638_p2 }
  0x1d   : > { %6646 = shalt.err (!%p6643_p4)
}
  0x1e   : > { %s6647_s17 = scalar_lea.vmem %s273_s23, 4096  ;;  %p6655_p9 = scmp.lt.s32.totalorder %s273_s23, %s273_s23 }
  0x1f   : > { %p6648_p7 = scmp.ne.s32.totalorder %s273_s23, %s6647_s17  ;;  %p6656_p6 = scmp.lt.s32.totalorder %s6647_s17, %s6647_s17 }
  0x21   : > { %p6650_p8 = pnand %p6648_p7, %p6636_p0  ;;  %p6657_p5 = por %p6656_p6, %p6655_p9 }
  0x23   : > { %p6651_p11 = pneg %p6650_p8 }
  0x25   : > { %p6658_p10 = pnand %p6657_p5, %p6651_p11 }
  0x27   : > { %6661 = shalt.err (!%p6658_p10)
}
  0x28   : > { %s6731_s22 = smov 64   ;;  %s6732_s25 = smov 4  }
  0x29   : > { %6156 = dma.hbm_to_vmem [thread:$0]  (!%p6844_p12), %s8432_s5, 4096, %s273_s23, [#allocation3], %s6731_s22, %s6731_s22, %s6732_s25  }
  0x2a   : > { %p8447_p13 = scmp.ne.s32.totalorder %s8445_s21, 0 }
  0x2c   : > { %306 = sbr.rel (%p8447_p13) target bundleno = 1841 (0x731), region = 56 }
  0x33   : > { %p8448_p1 = scmp.eq.s32.totalorder %s6808_s13, 0 }
  0x35   : > { %6707 = dma.done.wait (%p8448_p1), [#allocation3], 4096   ;;  %p8449_p0 = pmov %p8448_p1 }
  0x36   : > { %s342_s27 = smul.u32 28, %s6808_s13  ;;  %v6733_v0 = vmov 0   ;;  %v6876_v1 = vld [vmem:[%s8428_s1 + $0x44] ss:$16 sps:$4 sm:$0xff]   ;;  %v6886_v2 = vld [vmem:[%s8428_s1 + $0x40] ss:$16 sps:$4 sm:$0xff]  }
  0x37   : > { %6709 = vsyncadd (%p8449_p0), [#allocation3], 4294963200  ;;  %500 = vmatprep.mubr.bf16.mxu0 %v6733_v0  ;;  %510 = vmatprep.mubr.bf16.mxu1 %v6733_v0  ;;  %vm455_vm0 = vcmask 1045504   ;;  %v6893_v3 = vld [vmem:[%s8428_s1 + $0x64] ss:$16 sps:$4 sm:$0x3f]  }
  0x38   : > { %p343_p5 = scmp.lt.s32.totalorder %s342_s27, 55  ;;  %468 = vmatprep.subr.bf16.mxu0 %v6876_v1  ;;  %5810 = vmatprep.subr.bf16.mxu1 %v6876_v1  ;;  %v6207_v4 = vld [vmem:[%s8428_s1 + $0x60] ss:$16 sps:$4 sm:$0x3f]   ;;  %v6920_v10 = vld [vmem:[%s8428_s1 + $0x4c] ss:$16 sps:$4 sm:$0xff]  }
  0x39   : > { %469 = vmatpush1.bf16.msra.mxu0 %v6886_v2  ;;  %5812 = vmatpush1.bf16.msra.mxu1 %v6886_v2  ;;  %v6912_v8 = vsel %vm455_vm0, %v6207_v4, 0  ;;  %v6930_v13 = vld [vmem:[%s8428_s1 + $0xc4] ss:$16 sps:$4 sm:$0xff]   ;;  %vm445_vm1 = vcmask 228352   ;;  %v6211_v14 = vld [vmem:[%s8428_s1 + $0x48] ss:$16 sps:$4 sm:$0xff]  }
  0x3a   : > { %s8463_s27 = smov (!%p343_p5, %s342_s27), 55  ;;  %5076 = vmatprep.subr.msk.bf16.mxu0 %vm455_vm0, %v6893_v3  ;;  %5811 = vmatprep.subr.msk.bf16.mxu1 %vm455_vm0, %v6893_v3  ;;  %v6214_v15 = vld [vmem:[%s8428_s1 + $0xc0] ss:$16 sps:$4 sm:$0xff]   ;;  %v6218_v16 = vld [vmem:[%s8428_s1 + $0x6c] ss:$16 sps:$4 sm:$0x3f]  }
  0x3b   : > { %s5056_s24 = sshll.u32 %s8463_s27, 2  ;;  %v6220_v17 = vld [vmem:[%s8428_s1 + $0xe4] ss:$16 sps:$4 sm:$0x3f]   ;;  %v6974_v24 = vld [vmem:[%s8428_s1 + $0xcc] ss:$16 sps:$4 sm:$0xff]  }
  0x3c   : > { %s6881_s16 = scalar_lea.vmem %s8427_s0, %s5056_s24  ;;  %v6222_v18 = vld [vmem:[%s8428_s1 + $0x68] ss:$16 sps:$4 sm:$0x3f]   ;;  %v6223_v19 = vld [vmem:[%s8428_s1 + $0xe0] ss:$16 sps:$4 sm:$0x3f]  }
  0x3d   : > { %v356_v5 = vld [vmem:[%s6881_s16 + $0x1c] sm:$0xf]  ;;  %v6902_v6 = vld [vmem:[%s6881_s16 + $0x20] sm:$0xf]  ;;  %v6905_v7 = vld [vmem:[%s6881_s16 + $0x24] sm:$0xf]  ;;  %471 = vmatpush1.bf16.msra.mxu0 %v6912_v8  ;;  %5813 = vmatpush1.bf16.msra.mxu1 %v6912_v8 }
  0x3e   : > { %v6915_v9 = vld [vmem:[%s6881_s16 + $0x28] sm:$0xf]  ;;  %v5065_v11 = vcombine.low %v356_v5, %v6902_v6  ;;  %531 = vmatprep.subr.bf16.mxu1 %v6920_v10  ;;  %684 = vmatprep.subr.bf16.mxu0 %v6930_v13  ;;  %v6958_v20 = vld [vmem:[%s6881_s16 + $0x2c] sm:$0xf]  ;;  %v6961_v21 = vld [vmem:[%s6881_s16 + $0x30] sm:$0xf]  ;;  %v7094_v51 = vcombine.low %v6902_v6, %v6905_v7 }
  0x3f   : > { %v6925_v12 = vcombine.low %v6905_v7, %v6915_v9  ;;  %v6966_v22 = vsel %vm455_vm0, %v6222_v18, 0  ;;  %v6969_v23 = vsel %vm455_vm0, %v6223_v19, 0  ;;  %v371_v25 = vld [vmem:[%s6881_s16 + $0x58] sm:$0xf]  ;;  %v372_v26 = vld [vmem:[%s6881_s16 + $0x5c] sm:$0xf]  ;;  %v5067_v27 = vcombine.low %v6958_v20, %v6961_v21 }
  0x40   : > { %5077 = vmatmul.mubr.msk.bf16.vlgmr.msra.gmra.mrb[0].mxu0 %vm445_vm1, %v5065_v11  ;;  %v6982_v28 = vcombine.low %v371_v25, %v372_v26  ;;  %v370_v29 = vld [vmem:[%s6881_s16 + $0x54] sm:$0xf]  ;;  %v7001_v32 = vld [vmem:[%s8428_s1 + $0x140] ss:$16 sps:$4 sm:$0xff]   ;;  %v7016_v35 = vld [vmem:[%s8428_s1 + $0xc8] ss:$16 sps:$4 sm:$0xff]   ;;  %v7137_v59 = vcombine.low %v6915_v9, %v6958_v20 }
  0x41   : > { %5078 = vmatmul.mubr.msk.bf16.vlgmr.msra.gmra.mrb[0].mxu1 %vm445_vm1, %v6925_v12  ;;  %685 = vmatpush1.bf16.msra.mxu0 %v6214_v15  ;;  %v6991_v30 = vld [vmem:[%s8428_s1 + $0x144] ss:$16 sps:$4 sm:$0xff]   ;;  %v6994_v31 = vcombine.low %v370_v29, %v371_v25  ;;  %v6239_v34 = vld [vmem:[%s8428_s1 + $0x160] ss:$16 sps:$4 sm:$0x3f]   ;;  %vm6735_vm2 = vmmov 0  }
  0x42   : > { %532 = vmatpush1.bf16.msra.mxu1 %v6211_v14  ;;  %520 = vmatprep.mubr.bf16.mxu1 %v6733_v0  ;;  %v7006_v33 = vld [vmem:[%s8428_s1 + $0x164] ss:$16 sps:$4 sm:$0x3f]   ;;  %v7020_v36 = vld [vmem:[%s6881_s16 + $0x60] sm:$0xf]  ;;  %v7034_v39 = vsel %vm455_vm0, %v6239_v34, 0 }
  0x43   : > { %5080 = vmatprep.subr.msk.bf16.mxu1 %vm455_vm0, %v6218_v16  ;;  %5111 = vmatprep.subr.msk.bf16.mxu0 %vm455_vm0, %v6220_v17  ;;  %v7026_v37 = vld [vmem:[%s8428_s1 + $0xec] ss:$16 sps:$4 sm:$0x3f]   ;;  %v6236_v38 = vld [vmem:[%s8428_s1 + $0xe8] ss:$16 sps:$4 sm:$0x3f]   ;;  %v7043_v41 = vcombine.low %v372_v26, %v7020_v36 }
  0x44   : > { %716 = vmatprep.mubr.bf16.mxu0 %v6733_v0  ;;  %v7039_v40 = vld [vmem:[%s8428_s1 + $0x4] ss:$16 sps:$4 sm:$0xff]   ;;  %v7050_v42 = vsel %vm455_vm0, %v6236_v38, 0  ;;  %v7056_v43 = vld [vmem:[%s8428_s1 + $0x14c] ss:$16 sps:$4 sm:$0xff]   ;;  %s5662_s28 = sshll.u32 %s6808_s13, 7 }
  0x45   : > { %687 = vmatpush1.bf16.msra.mxu0 %v6969_v23  ;;  %v374_v44 = vld [vmem:[%s6881_s16 + $0x64] sm:$0xf]  ;;  %v7064_v45 = vld [vmem:[%s6881_s16 + $0x68] sm:$0xf]  ;;  %v7074_v47 = vld [vmem:[%s6881_s16 + $0x3c] sm:$0xf]  ;;  %s8385_s21 = scalar_lea.hbm %s8436_s9, %s5662_s28 }
  0x46   : > { %534 = vmatpush1.bf16.msra.mxu1 %v6966_v22  ;;  %890 = vmatprep.subr.bf16.mxu0 %v6991_v30  ;;  %v7071_v46 = vcombine.low %v374_v44, %v7064_v45  ;;  %v7077_v48 = vld [vmem:[%s6881_s16 + $0x40] sm:$0xf]  ;;  %v7100_v52 = vld [vmem:[%s8428_s1 + $0x24] ss:$16 sps:$4 sm:$0x3f]   ;;  %p8456_p9 = scmp.ne.s32.totalorder %s8443_s19, 0 }
  0x47   : > { %747 = vmatprep.subr.bf16.mxu1 %v6974_v24  ;;  %v7082_v49 = vcombine.low %v7074_v47, %v7077_v48  ;;  %v7090_v50 = vld [vmem:[%s8428_s1] ss:$16 sps:$4 sm:$0xff]   ;;  %v7109_v54 = vld [vmem:[%s8428_s1 + $0x148] ss:$16 sps:$4 sm:$0xff]   ;;  %v7126_v57 = vld [vmem:[%s8428_s1 + $0x84] ss:$16 sps:$4 sm:$0xff]  }
  0x48   : > { %v6253_v53 = vld [vmem:[%s8428_s1 + $0x20] ss:$16 sps:$4 sm:$0x3f]   ;;  %v7116_v55 = vld [vmem:[%s8428_s1 + $0x16c] ss:$16 sps:$4 sm:$0x3f]  }
  0x49   : > { %5079 = vmatmul.mubr.msk.bf16.gmra.mrb[4].mxu1 %vm445_vm1, %v5067_v27  ;;  %8450 = vst [vmem:[#allocation8_spill] sm:$0xff] %v7082_v49  ;;  %v6250_v56 = vld [vmem:[%s8428_s1 + $0x168] ss:$16 sps:$4 sm:$0x3f]   ;;  %v7131_v58 = vsel %vm455_vm0, %v6253_v53, 0  ;;  %s6736_s13 = smov [#allocation5]  }
  0x4a   : > { %563 = vmatprep.mubr.bf16.mxu1 %v6733_v0  ;;  %v7142_v60 = vld [vmem:[%s8428_s1 + $0xc] ss:$16 sps:$4 sm:$0xff]   ;;  %v7149_v61 = vsel %vm455_vm0, %v6250_v56, 0  ;;  %v362_v62 = vld [vmem:[%s6881_s16 + $0x34] sm:$0xf]  ;;  %s6666_s22 = sshll.u32 %s6736_s13, 4  ;;  %s6667_s22 = int_to_ptr.vmem [resolvable:$false] %s6666_s22 }
  0x4b   : > { %v7162_v63 = vcombine.low %v6961_v21, %v362_v62  ;;  %v349_v4 = vld [vmem:[%s6881_s16] sm:$0xf]  ;;  %v7167_v5 = vld [vmem:[%s6881_s16 + $0x4] sm:$0xf]  ;;  %v7195_v14 = vld [vmem:[%s8428_s1 + $0x8] ss:$16 sps:$4 sm:$0xff]  }
  0x4c   : > { %5112 = vmatmul.mubr.msk.bf16.vlgmr.msra.gmra.mrb[0].mxu0 %vm445_vm1, %v6994_v31  ;;  %v7175_v6 = vld [vmem:[%s8428_s1 + $0x80] ss:$16 sps:$4 sm:$0xff]   ;;  %v5154_v7 = vcombine.low %v349_v4, %v7167_v5  ;;  %v7183_v9 = vld [vmem:[%s8428_s1 + $0xa4] ss:$16 sps:$4 sm:$0x3f]   ;;  %s6668_s25 = scalar_lea.vmem %s6667_s22, 256 }
  0x4d   : > { %726 = vmatprep.mubr.bf16.mxu0 %v6733_v0  ;;  %891 = vmatpush1.bf16.msra.mxu0 %v7001_v32  ;;  %v7198_v15 = vld [vmem:[%s6881_s16 + $0x8] sm:$0xf]  ;;  %v7201_v16 = vld [vmem:[%s6881_s16 + $0xc] sm:$0xf]  ;;  %v7217_v19 = vld [vmem:[%s8428_s1 + $0x104] ss:$16 sps:$4 sm:$0xff]  }
  0x4e   : > { %5146 = vmatprep.subr.msk.bf16.mxu0 %vm455_vm0, %v7006_v33  ;;  %v7207_v17 = vld [vmem:[%s8428_s1 + $0x2c] ss:$16 sps:$4 sm:$0x3f]   ;;  %v6266_v18 = vld [vmem:[%s8428_s1 + $0x28] ss:$16 sps:$4 sm:$0x3f]   ;;  %v5155_v21 = vcombine.low %v7198_v15, %v7201_v16 }
  0x4f   : > { %v7231_v25 = vld [vmem:[%s8428_s1 + $0x8c] ss:$16 sps:$4 sm:$0xff]   ;;  %v7238_v26 = vsel %vm455_vm0, %v6266_v18, 0  ;;  %v7243_v29 = vld [vmem:[%s6881_s16 + $0x14] sm:$0xf] }
  0x50   : > { %v7260_v38 = vld [vmem:[%s8428_s1 + $0x100] ss:$16 sps:$4 sm:$0xff]   ;;  %v7270_v53 = vld [vmem:[%s8428_s1 + $0x124] ss:$16 sps:$4 sm:$0x3f]  }
  0x51   : > { %5081 = vmatmul.mubr.msk.bf16.vlgmr.msra.gmra.mrb[8].mxu1 %vm445_vm1, %v5065_v11  ;;  %893 = vmatpush1.bf16.msra.mxu0 %v7034_v39  ;;  %v6269_v11 = vld [vmem:[%s8428_s1 + $0xa0] ss:$16 sps:$4 sm:$0x3f]   ;;  %v7279_v62 = vld [vmem:[%s8428_s1 + $0x88] ss:$16 sps:$4 sm:$0xff]  }
  0x52   : > { %748 = vmatpush1.bf16.msra.mxu1 %v7016_v35  ;;  %573 = vmatprep.mubr.bf16.mxu1 %v6733_v0  ;;  %v7222_v20 = vsel %vm455_vm0, %v6269_v11, 0  ;;  %v6285_v56 = vld [vmem:[%s8428_s1 + $0x120] ss:$16 sps:$4 sm:$0x3f]   ;;  %v7282_v4 = vld [vmem:[%s6881_s16 + $0x44] sm:$0xf] }
  0x53   : > { %5115 = vmatprep.subr.msk.bf16.mxu1 %vm455_vm0, %v7026_v37  ;;  %1088 = vmatprep.subr.bf16.mxu0 %v7039_v40  ;;  %8451 = vst [vmem:[#allocation9_spill] sm:$0xff] %v7282_v4  ;;  %v6282_v11 = vld [vmem:[%s8428_s1 + $0xa8] ss:$16 sps:$4 sm:$0x3f]   ;;  %v7299_v18 = vsel %vm455_vm0, %v6285_v56, 0 }
  0x54   : > { %5113 = vmatmul.mubr.msk.bf16.gmra.mrb[4].mxu0 %vm445_vm1, %v7043_v41  ;;  %v7309_v49 = vld [vmem:[%s8428_s1 + $0x10c] ss:$16 sps:$4 sm:$0xff]   ;;  %v7316_v56 = vsel %vm455_vm0, %v6282_v11, 0 }
  0x55   : > { %736 = vmatprep.mubr.bf16.mxu0 %v6733_v0  ;;  %8452 = vst [vmem:[#allocation10_spill] sm:$0xff] %v7309_v49 }
  0x56   : > { %750 = vmatpush1.bf16.msra.mxu1 %v7050_v42 }
  0x57   : > { %953 = vmatprep.subr.bf16.mxu1 %v7056_v43 }
  0x59   : > { %5082 = vmatmul.mubr.msk.bf16.gmra.mrb[12].mxu1 %vm445_vm1, %v6925_v12  ;;  %v7190_v12 = vcombine.low %v7020_v36, %v374_v44  ;;  %v363_v36 = vld [vmem:[%s6881_s16 + $0x38] sm:$0xf] }
  0x5a   : > { %583 = vmatprep.mubr.bf16.mxu1 %v6733_v0  ;;  %v7265_v44 = vcombine.low %v363_v36, %v7074_v47  ;;  %v7289_v47 = vld [vmem:[%s8428_s1 + $0xac] ss:$16 sps:$4 sm:$0x3f]   ;;  %v7304_v36 = vcombine.low %v7077_v48, %v7282_v4  ;;  %v6293_v4 = vld [vmem:[%s8428_s1 + $0x128] ss:$16 sps:$4 sm:$0x3f]  }
  0x5b   : > { %v7323_v48 = vld [vmem:[%s6881_s16 + $0x4c] sm:$0xf] }
  0x5c   : > { %5114 = vmatmul.mubr.msk.bf16.gmra.mrb[8].mxu0 %vm445_vm1, %v7071_v46 }
  0x5d   : > { %922 = vmatprep.mubr.bf16.mxu0 %v6733_v0 }
  0x61   : > { %5083 = vmatmul.mubr.msk.bf16.gmra.mrb[16].mxu1 %vm445_vm1, %v5067_v27  ;;  %v353_v27 = vld [vmem:[%s6881_s16 + $0x10] sm:$0xf] }
  0x62   : > { %779 = vmatprep.mubr.bf16.mxu1 %v6733_v0  ;;  %v5156_v34 = vcombine.low %v353_v27, %v7243_v29 }
  0x64   : > { %5147 = vmatmul.mubr.msk.bf16.vlgmr.msra.gmra.mrb[0].mxu0 %vm445_vm1, %v7094_v51 }
  0x65   : > { %932 = vmatprep.mubr.bf16.mxu0 %v6733_v0  ;;  %1089 = vmatpush1.bf16.msra.mxu0 %v7090_v50 }
  0x66   : > { %5165 = vmatprep.subr.msk.bf16.mxu0 %vm455_vm0, %v7100_v52 }
  0x69   : > { %5116 = vmatmul.mubr.msk.bf16.vlgmr.msra.gmra.mrb[8].mxu1 %vm445_vm1, %v6994_v31  ;;  %1091 = vmatpush1.bf16.msra.mxu0 %v7131_v58 }
  0x6a   : > { %954 = vmatpush1.bf16.msra.mxu1 %v7109_v54  ;;  %789 = vmatprep.mubr.bf16.mxu1 %v6733_v0 }
  0x6b   : > { %5150 = vmatprep.subr.msk.bf16.mxu1 %vm455_vm0, %v7116_v55  ;;  %1286 = vmatprep.subr.bf16.mxu0 %v7126_v57 }
  0x6c   : > { %5148 = vmatmul.mubr.msk.bf16.gmra.mrb[4].mxu0 %vm445_vm1, %v7137_v59 }
  0x6d   : > { %942 = vmatprep.mubr.bf16.mxu0 %v6733_v0 }
  0x6e   : > { %956 = vmatpush1.bf16.msra.mxu1 %v7149_v61 }
  0x6f   : > { %1151 = vmatprep.subr.bf16.mxu1 %v7142_v60 }
  0x71   : > { %5117 = vmatmul.mubr.msk.bf16.gmra.mrb[12].mxu1 %vm445_vm1, %v7043_v41 }
  0x72   : > { %799 = vmatprep.mubr.bf16.mxu1 %v6733_v0 }
  0x74   : > { %5149 = vmatmul.mubr.msk.bf16.gmra.mrb[8].mxu0 %vm445_vm1, %v7162_v63 }
  0x75   : > { %1120 = vmatprep.mubr.bf16.mxu0 %v6733_v0 }
  0x79   : > { %5118 = vmatmul.mubr.msk.bf16.gmra.mrb[16].mxu1 %vm445_vm1, %v7071_v46 }
  0x7a   : > { %985 = vmatprep.mubr.bf16.mxu1 %v6733_v0 }
  0x7c   : > { %5166 = vmatmul.mubr.msk.bf16.vlgmr.msra.gmra.mrb[0].mxu0 %vm445_vm1, %v5154_v7 }
  0x7d   : > { %1130 = vmatprep.mubr.bf16.mxu0 %v6733_v0  ;;  %1287 = vmatpush1.bf16.msra.mxu0 %v7175_v6 }
  0x7e   : > { %5184 = vmatprep.subr.msk.bf16.mxu0 %vm455_vm0, %v7183_v9 }
  0x81   : > { %5151 = vmatmul.mubr.msk.bf16.vlgmr.msra.gmra.mrb[8].mxu1 %vm445_vm1, %v7094_v51  ;;  %1289 = vmatpush1.bf16.msra.mxu0 %v7222_v20 }
  0x82   : > { %1152 = vmatpush1.bf16.msra.mxu1 %v7195_v14  ;;  %995 = vmatprep.mubr.bf16.mxu1 %v6733_v0 }
  0x83   : > { %5169 = vmatprep.subr.msk.bf16.mxu1 %vm455_vm0, %v7207_v17  ;;  %1498 = vmatprep.subr.bf16.mxu0 %v7217_v19 }
  0x84   : > { %5167 = vmatmul.mubr.msk.bf16.gmra.mrb[4].mxu0 %vm445_vm1, %v5155_v21 }
  0x85   : > { %1140 = vmatprep.mubr.bf16.mxu0 %v6733_v0 }
  0x86   : > { %1154 = vmatpush1.bf16.msra.mxu1 %v7238_v26 }
  0x87   : > { %1349 = vmatprep.subr.bf16.mxu1 %v7231_v25 }
  0x89   : > { %5152 = vmatmul.mubr.msk.bf16.gmra.mrb[12].mxu1 %vm445_vm1, %v7137_v59 }
  0x8a   : > { %1005 = vmatprep.mubr.bf16.mxu1 %v6733_v0 }
  0x8c   : > { %5168 = vmatmul.mubr.msk.bf16.gmra.mrb[8].mxu0 %vm445_vm1, %v5156_v34 }
  0x8d   : > { %1318 = vmatprep.mubr.bf16.mxu0 %v6733_v0 }
  0x91   : > { %5153 = vmatmul.mubr.msk.bf16.gmra.mrb[16].mxu1 %vm445_vm1, %v7162_v63 }
  0x92   : > { %1183 = vmatprep.mubr.bf16.mxu1 %v6733_v0 }
  0x94   : > { %5185 = vmatmul.mubr.msk.bf16.vlgmr.msra.gmra.mrb[0].mxu0 %vm445_vm1, %v7265_v44 }
  0x95   : > { %1328 = vmatprep.mubr.bf16.mxu0 %v6733_v0  ;;  %1499 = vmatpush1.bf16.msra.mxu0 %v7260_v38 }
  0x96   : > { %5203 = vmatprep.subr.msk.bf16.mxu0 %vm455_vm0, %v7270_v53 }
  0x99   : > { %5170 = vmatmul.mubr.msk.bf16.vlgmr.msra.gmra.mrb[8].mxu1 %vm445_vm1, %v5154_v7  ;;  %1501 = vmatpush1.bf16.msra.mxu0 %v7299_v18  ;;  %v7320_v7 = vld [vmem:[%s6881_s16 + $0x48] sm:$0xf] }
  0x9a   : > { %1350 = vmatpush1.bf16.msra.mxu1 %v7279_v62  ;;  %1193 = vmatprep.mubr.bf16.mxu1 %v6733_v0  ;;  %v7337_v11 = vcombine.low %v7320_v7, %v7323_v48 }
  0x9b   : > { %5188 = vmatprep.subr.msk.bf16.mxu1 %vm455_vm0, %v7289_v47  ;;  %1685 = vmatprep.subr.bf16.mxu0 %v6876_v1  ;;  %v7341_v1 = vsel %vm455_vm0, %v6293_v4, 0  ;;  %v7362_v4 = vld [vmem:[%s8428_s1 + $0x12c] ss:$16 sps:$4 sm:$0x3f]  }
  0x9c   : > { %5186 = vmatmul.mubr.msk.bf16.gmra.mrb[4].mxu0 %vm445_vm1, %v7304_v36 }
  0x9d   : > { %1338 = vmatprep.mubr.bf16.mxu0 %v6733_v0 }
  0x9e   : > { %1352 = vmatpush1.bf16.msra.mxu1 %v7316_v56 }
  0x9f   : > { %1561 = vmatprep.subr.bf16.mxu1 %v7309_v49  ;;  %v7348_v49 = vcombine.low %v7167_v5, %v7198_v15  ;;  %v7371_v5 = vcombine.low %v7201_v16, %v353_v27  ;;  %v355_v15 = vld [vmem:[%s6881_s16 + $0x18] sm:$0xf] }
  0xa1   : > { %5171 = vmatmul.mubr.msk.bf16.gmra.mrb[12].mxu1 %vm445_vm1, %v5155_v21  ;;  %v7355_v21 = vld [vmem:[%s8428_s1 + $0x108] ss:$16 sps:$4 sm:$0xff]  }
  0xa2   : > { %1203 = vmatprep.mubr.bf16.mxu1 %v6733_v0 }
  0xa4   : > { %5187 = vmatmul.mubr.msk.bf16.gmra.mrb[8].mxu0 %vm445_vm1, %v7337_v11 }
  0xa5   : > { %1530 = vmatprep.mubr.bf16.mxu0 %v6733_v0 }
  0xa9   : > { %5172 = vmatmul.mubr.msk.bf16.gmra.mrb[16].mxu1 %vm445_vm1, %v5156_v34 }
  0xaa   : > { %1381 = vmatprep.mubr.bf16.mxu1 %v6733_v0 }
  0xac   : > { %5204 = vmatmul.mubr.msk.bf16.vlgmr.msra.gmra.mrb[0].mxu0 %vm445_vm1, %v7348_v49 }
  0xad   : > { %1540 = vmatprep.mubr.bf16.mxu0 %v6733_v0  ;;  %1686 = vmatpush1.bf16.msra.mxu0 %v6886_v2  ;;  %v7388_v2 = vcombine.low %v7243_v29, %v355_v15  ;;  %v6307_v15 = vld [vmem:[%s8430_s3 + $0x140] ss:$16 sps:$4 sm:$0xff]  }
  0xae   : > { %5212 = vmatprep.subr.msk.bf16.mxu0 %vm455_vm0, %v6893_v3  ;;  %v6630_v3 = vld [vmem:[%s8428_s1 + $0xc0] ss:$16 sps:$4 sm:$0xff]  }
  0xb1   : > { %5189 = vmatmul.mubr.msk.bf16.vlgmr.msra.gmra.mrb[8].mxu1 %vm445_vm1, %v7265_v44  ;;  %1688 = vmatpush1.bf16.msra.mxu0 %v6912_v8  ;;  %v6631_v8 = vld [vmem:[%s8428_s1 + $0xe4] ss:$16 sps:$4 sm:$0x3f]  }
  0xb2   : > { %1562 = vmatpush1.bf16.msra.mxu1 %v7355_v21  ;;  %1391 = vmatprep.mubr.bf16.mxu1 %v6733_v0 }
  0xb3   : > { %5207 = vmatprep.subr.msk.bf16.mxu1 %vm455_vm0, %v7362_v4  ;;  %1811 = vmatprep.subr.bf16.mxu0 %v6930_v13  ;;  %v6633_v13 = vld [vmem:[%s8428_s1 + $0x6c] ss:$16 sps:$4 sm:$0x3f]  }
  0xb4   : > { %5205 = vmatmul.mubr.msk.bf16.gmra.mrb[4].mxu0 %vm445_vm1, %v7371_v5 }
  0xb5   : > { %1550 = vmatprep.mubr.bf16.mxu0 %v6733_v0 }
  0xb6   : > { %1564 = vmatpush1.bf16.msra.mxu1 %v7341_v1 }
  0xb7   : > { %1748 = vmatprep.subr.bf16.mxu1 %v6920_v10  ;;  %v6632_v10 = vld [vmem:[%s8428_s1 + $0x48] ss:$16 sps:$4 sm:$0xff]  }
  0xb9   : > { %5190 = vmatmul.mubr.msk.bf16.gmra.mrb[12].mxu1 %vm445_vm1, %v7304_v36 }
  0xba   : > { %1401 = vmatprep.mubr.bf16.mxu1 %v6733_v0 }
  0xbc   : > { %5206 = vmatmul.mubr.msk.bf16.gmra.mrb[8].mxu0 %vm445_vm1, %v7388_v2 }
  0xbd   : > { %1717 = vmatprep.mubr.bf16.mxu0 %v6733_v0 }
  0xc1   : > { %5191 = vmatmul.mubr.msk.bf16.gmra.mrb[16].mxu1 %vm445_vm1, %v7337_v11 }
  0xc2   : > { %1593 = vmatprep.mubr.bf16.mxu1 %v6733_v0 }
  0xc4   : > { %5213 = vmatmul.mubr.msk.bf16.vlgmr.msra.gmra.mrb[12].mxu0 %vm445_vm1, %v6994_v31 }
  0xc5   : > { %1727 = vmatprep.mubr.bf16.mxu0 %v6733_v0  ;;  %1812 = vmatpush1.bf16.msra.mxu0 %v6630_v3 }
  0xc6   : > { %5220 = vmatprep.subr.msk.bf16.mxu0 %vm455_vm0, %v6631_v8 }
  0xc9   : > { %5208 = vmatmul.mubr.msk.bf16.vlgmr.msra.gmra.mrb[8].mxu1 %vm445_vm1, %v7348_v49  ;;  %1814 = vmatpush1.bf16.msra.mxu0 %v6969_v23 }
  0xca   : > { %1749 = vmatpush1.bf16.msra.mxu1 %v6632_v10  ;;  %1603 = vmatprep.mubr.bf16.mxu1 %v6733_v0  ;;  %v6310_v10 = vld [vmem:[%s8430_s3 + $0x320] ss:$16 sps:$4 sm:$0xff]  }
  0xcb   : > { %5216 = vmatprep.subr.msk.bf16.mxu1 %vm455_vm0, %v6633_v13  ;;  %1951 = vmatprep.subr.bf16.mxu0 %v6991_v30  ;;  %v6315_v13 = vld [vmem:[%s8430_s3 + $0x164] ss:$16 sps:$4 sm:$0xff]  }
  0xcc   : > { %5214 = vmatmul.mubr.msk.bf16.gmra.mrb[16].mxu0 %vm445_vm1, %v7043_v41 }
  0xcd   : > { %1737 = vmatprep.mubr.bf16.mxu0 %v6733_v0 }
  0xce   : > { %1751 = vmatpush1.bf16.msra.mxu1 %v6966_v22  ;;  %v376_v22 = vld [vmem:[%s6881_s16 + $0x6c] sm:$0xf] }
  0xcf   : > { %1874 = vmatprep.subr.bf16.mxu1 %v6974_v24  ;;  %v5230_v23 = vcombine.low %v7064_v45, %v376_v22 }
  0xd1   : > { %5209 = vmatmul.mubr.msk.bf16.gmra.mrb[12].mxu1 %vm445_vm1, %v7371_v5 }
  0xd2   : > { %1613 = vmatprep.mubr.bf16.mxu1 %v6733_v0 }
  0xd4   : > { %5215 = vmatmul.mubr.msk.bf16.gmra.mrb[20].mxu0 %vm445_vm1, %v7071_v46 }
  0xd5   : > { %1843 = vmatprep.mubr.bf16.mxu0 %v6733_v0 }
  0xd9   : > { %5210 = vmatmul.mubr.msk.bf16.gmra.mrb[16].mxu1 %vm445_vm1, %v7388_v2 }
  0xda   : > { %1780 = vmatprep.mubr.bf16.mxu1 %v6733_v0 }
  0xdc   : > { %5221 = vmatmul.mubr.msk.bf16.vlgmr.msra.gmra.mrb[12].mxu0 %vm445_vm1, %v7094_v51 }
  0xdd   : > { %1853 = vmatprep.mubr.bf16.mxu0 %v6733_v0  ;;  %1952 = vmatpush1.bf16.msra.mxu0 %v7001_v32 }
  0xde   : > { %5231 = vmatprep.subr.msk.bf16.mxu0 %vm455_vm0, %v7006_v33 }
  0xe1   : > { %5217 = vmatmul.mubr.msk.bf16.vlgmr.msra.gmra.mrb[20].mxu1 %vm445_vm1, %v6994_v31  ;;  %1954 = vmatpush1.bf16.msra.mxu0 %v7034_v39  ;;  %v8453_v39 = vld [vmem:[#allocation10_spill] sm:$0xff] }
  0xe2   : > { %1875 = vmatpush1.bf16.msra.mxu1 %v7016_v35  ;;  %1790 = vmatprep.mubr.bf16.mxu1 %v6733_v0 }
  0xe3   : > { %5224 = vmatprep.subr.msk.bf16.mxu1 %vm455_vm0, %v7026_v37  ;;  %2077 = vmatprep.subr.bf16.mxu0 %v7039_v40  ;;  %v8454_v40 = vld [vmem:[#allocation8_spill] sm:$0xff] }
  0xe4   : > { %5222 = vmatmul.mubr.msk.bf16.gmra.mrb[16].mxu0 %vm445_vm1, %v7137_v59 }
  0xe5   : > { %1863 = vmatprep.mubr.bf16.mxu0 %v6733_v0 }
  0xe6   : > { %1877 = vmatpush1.bf16.msra.mxu1 %v7050_v42 }
  0xe7   : > { %2014 = vmatprep.subr.bf16.mxu1 %v7056_v43  ;;  %v369_v43 = vld [vmem:[%s6881_s16 + $0x50] sm:$0xf]  ;;  %s339_s16 = sand.u32 1, %s6720_s10  }
  0xe8   : > { %v5257_v45 = vcombine.low %v7323_v48, %v369_v43  ;;  %s5055_s26 = sshll.u32 %s339_s16, 3  ;;  %s4965_s14 = scalar_lea.sflag [#allocation4], %s339_s16 }
  0xe9   : > { %5218 = vmatmul.mubr.msk.bf16.gmra.mrb[24].mxu1 %vm445_vm1, %v7043_v41  ;;  %v8455_v41 = vld [vmem:[#allocation9_spill] sm:$0xff]  ;;  %s341_s27 = scalar_lea.vmem [#allocation5], %s5055_s26 }
  0xea   : > { %1800 = vmatprep.mubr.bf16.mxu1 %v6733_v0  ;;  %v5256_v42 = vcombine.low %v8455_v41, %v7320_v7  ;;  %s4978_s24 = sshll.u32 %s341_s27, 4  ;;  %s8387_s24 = int_to_ptr.vmem [resolvable:$true] %s4978_s24 }
  0xeb   : > { %s6662_s17 = scalar_lea.vmem %s8387_s24, 128  ;;  %p6669_p2 = scmp.lt.s32.totalorder %s8387_s24, %s6667_s22 }
  0xec   : > { %5223 = vmatmul.mubr.msk.bf16.gmra.mrb[20].mxu0 %vm445_vm1, %v7162_v63  ;;  %p6663_p6 = scmp.ne.s32.totalorder %s8387_s24, %s6662_s17  ;;  %p6670_p3 = scmp.lt.s32.totalorder %s6668_s25, %s6662_s17 }
  0xed   : > { %1983 = vmatprep.mubr.bf16.mxu0 %v6733_v0 }
  0xee   : > { %p6664_p10 = pnand %p6663_p6, %p8456_p9  ;;  %p6671_p4 = por %p6670_p3, %p6669_p2 }
  0xf0   : > { %p6665_p12 = pneg %p6664_p10 }
  0xf1   : > { %5219 = vmatmul.mubr.msk.bf16.gmra.mrb[28].mxu1 %vm445_vm1, %v7071_v46 }
  0xf2   : > { %1906 = vmatprep.mubr.bf16.mxu1 %v6733_v0  ;;  %p6672_p7 = pnand %p6671_p4, %p6665_p12 }
  0xf4   : > { %5232 = vmatmul.mubr.msk.bf16.vlgmr.msra.gmra.mrb[12].mxu0 %vm445_vm1, %v6982_v28 }
  0xf5   : > { %1993 = vmatprep.mubr.bf16.mxu0 %v6733_v0  ;;  %2078 = vmatpush1.bf16.msra.mxu0 %v7090_v50 }
  0xf6   : > { %5239 = vmatprep.subr.msk.bf16.mxu0 %vm455_vm0, %v7100_v52 }
  0xf9   : > { %5225 = vmatmul.mubr.msk.bf16.vlgmr.msra.gmra.mrb[20].mxu1 %vm445_vm1, %v7094_v51  ;;  %2080 = vmatpush1.bf16.msra.mxu0 %v7131_v58 }
  0xfa   : > { %2015 = vmatpush1.bf16.msra.mxu1 %v7109_v54  ;;  %1916 = vmatprep.mubr.bf16.mxu1 %v6733_v0 }
  0xfb   : > { %5235 = vmatprep.subr.msk.bf16.mxu1 %vm455_vm0, %v7116_v55  ;;  %2203 = vmatprep.subr.bf16.mxu0 %v7126_v57 }
  0xfc   : > { %5233 = vmatmul.mubr.msk.bf16.gmra.mrb[16].mxu0 %vm445_vm1, %v7190_v12 }
  0xfd   : > { %2003 = vmatprep.mubr.bf16.mxu0 %v6733_v0 }
  0xfe   : > { %2017 = vmatpush1.bf16.msra.mxu1 %v7149_v61 }
  0xff   : > { %2140 = vmatprep.subr.bf16.mxu1 %v7142_v60 }
 0x101   : > { %5226 = vmatmul.mubr.msk.bf16.gmra.mrb[24].mxu1 %vm445_vm1, %v7137_v59 }
 0x102   : > { %1926 = vmatprep.mubr.bf16.mxu1 %v6733_v0 }
 0x104   : > { %5234 = vmatmul.mubr.msk.bf16.gmra.mrb[20].mxu0 %vm445_vm1, %v5230_v23 }
 0x105   : > { %2109 = vmatprep.mubr.bf16.mxu0 %v6733_v0 }
 0x109   : > { %5227 = vmatmul.mubr.msk.bf16.gmra.mrb[28].mxu1 %vm445_vm1, %v7162_v63 }
 0x10a   : > { %2046 = vmatprep.mubr.bf16.mxu1 %v6733_v0 }
 0x10c   : > { %5240 = vmatmul.mubr.msk.bf16.vlgmr.msra.gmra.mrb[12].mxu0 %vm445_vm1, %v7265_v44 }
 0x10d   : > { %2119 = vmatprep.mubr.bf16.mxu0 %v6733_v0  ;;  %2204 = vmatpush1.bf16.msra.mxu0 %v7175_v6 }
 0x10e   : > { %5247 = vmatprep.subr.msk.bf16.mxu0 %vm455_vm0, %v7183_v9 }
 0x111   : > { %5236 = vmatmul.mubr.msk.bf16.vlgmr.msra.gmra.mrb[20].mxu1 %vm445_vm1, %v6982_v28  ;;  %2206 = vmatpush1.bf16.msra.mxu0 %v7222_v20 }
 0x112   : > { %2141 = vmatpush1.bf16.msra.mxu1 %v7195_v14  ;;  %2056 = vmatprep.mubr.bf16.mxu1 %v6733_v0 }
 0x113   : > { %5243 = vmatprep.subr.msk.bf16.mxu1 %vm455_vm0, %v7207_v17  ;;  %2367 = vmatprep.subr.bf16.mxu0 %v7217_v19 }
 0x114   : > { %v7503_v24 = vpop.f32.mrb[0].mxu1  ;;  %5241 = vmatmul.mubr.msk.bf16.gmra.mrb[16].mxu0 %vm445_vm1, %v7304_v36 }
 0x115   : > { %v7506_v30 = vpop.f32.mrb[1].mxu1  ;;  %2129 = vmatprep.mubr.bf16.mxu0 %v6733_v0 }
 0x116   : > { %v7510_v31 = vpop.f32.mrb[2].mxu1  ;;  %2143 = vmatpush1.bf16.msra.mxu1 %v7238_v26 }
 0x117   : > { %v7514_v28 = vpop.f32.mrb[3].mxu1  ;;  %2266 = vmatprep.subr.bf16.mxu1 %v7231_v25 }
 0x119   : > { %5237 = vmatmul.mubr.msk.bf16.gmra.mrb[24].mxu1 %vm445_vm1, %v7190_v12 }
 0x11a   : > { %2066 = vmatprep.mubr.bf16.mxu1 %v6733_v0 }
 0x11c   : > { %v7520_v32 = vpop.f32.mrb[4].mxu1  ;;  %5242 = vmatmul.mubr.msk.bf16.gmra.mrb[20].mxu0 %vm445_vm1, %v7337_v11 }
 0x11d   : > { %v7522_v33 = vpop.f32.mrb[5].mxu1  ;;  %2235 = vmatprep.mubr.bf16.mxu0 %v6733_v0 }
 0x11e   : > { %v7526_v35 = vpop.f32.mrb[6].mxu1 }
 0x11f   : > { %v7529_v37 = vpop.f32.mrb[7].mxu1 }
 0x121   : > { %5238 = vmatmul.mubr.msk.bf16.gmra.mrb[28].mxu1 %vm445_vm1, %v5230_v23 }
 0x122   : > { %2172 = vmatprep.mubr.bf16.mxu1 %v6733_v0 }
 0x124   : > { %5248 = vmatmul.mubr.msk.bf16.vlgmr.msra.gmra.mrb[12].mxu0 %vm445_vm1, %v7348_v49 }
 0x125   : > { %2245 = vmatprep.mubr.bf16.mxu0 %v6733_v0  ;;  %2368 = vmatpush1.bf16.msra.mxu0 %v7260_v38  ;;  %v6300_v38 = vld [vmem:[%s8430_s3 + $0x104] ss:$16 sps:$4 sm:$0xff]  }
 0x126   : > { %5258 = vmatprep.subr.msk.bf16.mxu0 %vm455_vm0, %v7270_v53  ;;  %v6303_v53 = vld [vmem:[%s8430_s3 + $0x124] ss:$16 sps:$4 sm:$0xff]  }
 0x129   : > { %5244 = vmatmul.mubr.msk.bf16.vlgmr.msra.gmra.mrb[20].mxu1 %vm445_vm1, %v7265_v44  ;;  %2370 = vmatpush1.bf16.msra.mxu0 %v7299_v18  ;;  %v6298_v44 = vld [vmem:[%s8430_s3 + $0x100] ss:$16 sps:$4 sm:$0xff]  }
 0x12a   : > { %2267 = vmatpush1.bf16.msra.mxu1 %v7279_v62  ;;  %2182 = vmatprep.mubr.bf16.mxu1 %v6733_v0  ;;  %v6304_v18 = vld [vmem:[%s8430_s3 + $0x300] ss:$16 sps:$4 sm:$0xff]  }
 0x12b   : > { %5251 = vmatprep.subr.msk.bf16.mxu1 %vm455_vm0, %v7289_v47  ;;  %v6301_v47 = vld [vmem:[%s8430_s3 + $0x120] ss:$16 sps:$4 sm:$0xff]  }
 0x12c   : > { %5249 = vmatmul.mubr.msk.bf16.gmra.mrb[16].mxu0 %vm445_vm1, %v7371_v5 }
 0x12d   : > { %2255 = vmatprep.mubr.bf16.mxu0 %v6733_v0 }
 0x12e   : > { %2269 = vmatpush1.bf16.msra.mxu1 %v7316_v56  ;;  %v6306_v56 = vld [vmem:[%s8430_s3 + $0x304] ss:$16 sps:$4 sm:$0xff]  }
 0x12f   : > { %2430 = vmatprep.subr.bf16.mxu1 %v8453_v39  ;;  %3112 = vmatprep.subr.bf16.mxu0 %v6306_v56  ;;  %v6319_v39 = vld [vmem:[%s8430_s3 + $0x180] ss:$16 sps:$4 sm:$0xff]  }
 0x131   : > { %5245 = vmatmul.mubr.msk.bf16.gmra.mrb[24].mxu1 %vm445_vm1, %v7304_v36 }
 0x132   : > { %2192 = vmatprep.mubr.bf16.mxu1 %v6733_v0 }
 0x134   : > { %5250 = vmatmul.mubr.msk.bf16.gmra.mrb[20].mxu0 %vm445_vm1, %v7388_v2 }
 0x135   : > { %2399 = vmatprep.mubr.bf16.mxu0 %v6733_v0 }
 0x139   : > { %5246 = vmatmul.mubr.msk.bf16.gmra.mrb[28].mxu1 %vm445_vm1, %v7337_v11  ;;  %v7644_v11 = vld [vmem:[%s8429_s2] ss:$0 sm:$0xff] }
 0x13a   : > { %2298 = vmatprep.mubr.bf16.mxu1 %v6733_v0 }
 0x13c   : > { %5259 = vmatmul.mubr.msk.bf16.vlgmr.msra.gmra.mrb[12].mxu0 %vm445_vm1, %v8454_v40 }
 0x13d   : > { %2409 = vmatprep.mubr.bf16.mxu0 %v6733_v0  ;;  %3113 = vmatpush1.bf16.msra.mxu0 %v6304_v18 }
 0x141   : > { %5252 = vmatmul.mubr.msk.bf16.vlgmr.msra.gmra.mrb[20].mxu1 %vm445_vm1, %v7348_v49 }
 0x142   : > { %2431 = vmatpush1.bf16.msra.mxu1 %v7355_v21  ;;  %2308 = vmatprep.mubr.bf16.mxu1 %v6733_v0  ;;  %v6309_v21 = vld [vmem:[%s8430_s3 + $0x144] ss:$16 sps:$4 sm:$0xff]  }
 0x143   : > { %5262 = vmatprep.subr.msk.bf16.mxu1 %vm455_vm0, %v7362_v4 }
 0x144   : > { %5260 = vmatmul.mubr.msk.bf16.gmra.mrb[16].mxu0 %vm445_vm1, %v5256_v42 }
 0x145   : > { %2419 = vmatprep.mubr.bf16.mxu0 %v6733_v0 }
 0x146   : > { %2433 = vmatpush1.bf16.msra.mxu1 %v7341_v1 }
 0x147   : > { %2776 = vmatprep.subr.bf16.mxu1 %v6300_v38 }
 0x149   : > { %5253 = vmatmul.mubr.msk.bf16.gmra.mrb[24].mxu1 %vm445_vm1, %v7371_v5 }
 0x14a   : > { %2318 = vmatprep.mubr.bf16.mxu1 %v6733_v0 }
 0x14c   : > { %5261 = vmatmul.mubr.msk.bf16.gmra.mrb[20].mxu0 %vm445_vm1, %v5257_v45 }
 0x14d   : > { %3144 = vmatprep.mubr.bf16.mxu0 %v6733_v0 }
 0x151   : > { %5254 = vmatmul.mubr.msk.bf16.gmra.mrb[28].mxu1 %vm445_vm1, %v7388_v2  ;;  %v6312_v2 = vld [vmem:[%s8430_s3 + $0x324] ss:$16 sps:$4 sm:$0xff]  }
 0x152   : > { %2462 = vmatprep.mubr.bf16.mxu1 %v6733_v0  ;;  %3114 = vmatprep.subr.bf16.mxu0 %v6312_v2 }
 0x153   : > { %3115 = vmatpush1.bf16.msra.mxu0 %v6310_v10 }
 0x159   : > { %5263 = vmatmul.mubr.msk.bf16.vlgmr.msra.gmra.mrb[20].mxu1 %vm445_vm1, %v8454_v40  ;;  %v6321_v40 = vld [vmem:[%s8430_s3 + $0x184] ss:$16 sps:$4 sm:$0xff]  }
 0x15a   : > { %2472 = vmatprep.mubr.bf16.mxu1 %v6733_v0  ;;  %2777 = vmatpush1.bf16.msra.mxu1 %v6298_v44  ;;  %v6331_v44 = vld [vmem:[%s8430_s3 + $0x1c0] ss:$16 sps:$4 sm:$0xff]  }
 0x15b   : > { %2778 = vmatprep.subr.bf16.mxu1 %v6303_v53  ;;  %v6336_v53 = vld [vmem:[%s8430_s3 + $0x3a4] ss:$16 sps:$4 sm:$0xff]  }
 0x15e   : > { %2779 = vmatpush1.bf16.msra.mxu1 %v6301_v47 }
 0x15f   : > { %2780 = vmatprep.subr.bf16.mxu1 %v6309_v21  ;;  %v6346_v21 = vld [vmem:[%s8430_s3 + $0x3e0] ss:$16 sps:$4 sm:$0xff]  }
 0x161   : > { %5264 = vmatmul.mubr.msk.bf16.gmra.mrb[24].mxu1 %vm445_vm1, %v5256_v42  ;;  %v6324_v42 = vld [vmem:[%s8430_s3 + $0x364] ss:$16 sps:$4 sm:$0xff]  }
 0x162   : > { %2482 = vmatprep.mubr.bf16.mxu1 %v6733_v0  ;;  %2781 = vmatpush1.bf16.msra.mxu1 %v6307_v15 }
 0x163   : > { %2782 = vmatprep.subr.bf16.mxu1 %v6315_v13 }
 0x169   : > { %5265 = vmatmul.mubr.msk.bf16.gmra.mrb[28].mxu1 %vm445_vm1, %v5257_v45 }
 0x16a   : > { %2808 = vmatprep.mubr.bf16.mxu1 %v6733_v0 }
 0x17f   : > { %v1532_v46 = vpop.f32.mrb[0].mxu0 }
 0x180   : > { %v1534_v49 = vpop.f32.mrb[1].mxu0 }
 0x181   : > { %v1648_v50 = vmax.f32 %v1532_v46, %v1534_v49  ;;  %v1536_v51 = vpop.f32.mrb[2].mxu0  ;;  %v6322_v49 = vld [vmem:[%s8430_s3 + $0x360] ss:$16 sps:$4 sm:$0xff]  }
 0x182   : > { %v1538_v52 = vpop.f32.mrb[3].mxu0 }
 0x183   : > { %v1649_v54 = vmax.f32 %v1536_v51, %v1538_v52  ;;  %v6327_v52 = vld [vmem:[%s8430_s3 + $0x1a4] ss:$16 sps:$4 sm:$0xff]  }
 0x187   : > { %v1542_v55 = vpop.f32.mrb[4].mxu0 }
 0x188   : > { %v7592_v57 = vadd.f32 %v1542_v55, %v7503_v24  ;;  %v1544_v58 = vpop.f32.mrb[5].mxu0  ;;  %v6313_v24 = vld [vmem:[%s8430_s3 + $0x160] ss:$16 sps:$4 sm:$0xff]  }
 0x189   : > { %v7595_v59 = vadd.f32 %v1544_v58, %v7506_v30  ;;  %v1546_v60 = vpop.f32.mrb[6].mxu0  ;;  %v6316_v30 = vld [vmem:[%s8430_s3 + $0x340] ss:$16 sps:$4 sm:$0xff]   ;;  %2783 = vmatpush1.bf16.msra.mxu1 %v6313_v24 }
 0x18a   : > { %v7598_v61 = vadd.f32 %v1546_v60, %v7510_v31  ;;  %v1548_v63 = vpop.f32.mrb[7].mxu0  ;;  %2784 = vmatprep.subr.bf16.mxu1 %v6321_v40  ;;  %v6325_v58 = vld [vmem:[%s8430_s3 + $0x1a0] ss:$16 sps:$4 sm:$0xff]   ;;  %v6330_v60 = vld [vmem:[%s8430_s3 + $0x384] ss:$16 sps:$4 sm:$0xff]  }
 0x18b   : > { %v1650_v6 = vmax.f32 %v7592_v57, %v7595_v59  ;;  %v7603_v9 = vadd.f32 %v1548_v63, %v7514_v28 }
 0x18d   : > { %v1651_v12 = vmax.f32 %v7598_v61, %v7603_v9  ;;  %2785 = vmatpush1.bf16.msra.mxu1 %v6319_v39 }
 0x18e   : > { %2786 = vmatprep.subr.bf16.mxu1 %v6327_v52 }
 0x18f   : > { %v1552_v14 = vpop.f32.mrb[8].mxu0 }
 0x190   : > { %v7608_v16 = vadd.f32 %v1552_v14, %v7520_v32  ;;  %v1554_v17 = vpop.f32.mrb[9].mxu0  ;;  %v6318_v32 = vld [vmem:[%s8430_s3 + $0x344] ss:$16 sps:$4 sm:$0xff]  }
 0x191   : > { %v7611_v19 = vadd.f32 %v1554_v17, %v7522_v33  ;;  %v1556_v20 = vpop.f32.mrb[10].mxu0  ;;  %3116 = vmatprep.subr.bf16.mxu0 %v6318_v32  ;;  %2787 = vmatpush1.bf16.msra.mxu1 %v6325_v58  ;;  %v6333_v17 = vld [vmem:[%s8430_s3 + $0x1c4] ss:$16 sps:$4 sm:$0xff]  }
 0x192   : > { %v7614_v25 = vadd.f32 %v1556_v20, %v7526_v35  ;;  %v1558_v26 = vpop.f32.mrb[11].mxu0  ;;  %3117 = vmatpush1.bf16.msra.mxu0 %v6316_v30  ;;  %2788 = vmatprep.subr.bf16.mxu1 %v6333_v17 }
 0x193   : > { %v1652_v27 = vmax.f32 %v7608_v16, %v7611_v19  ;;  %v7619_v29 = vadd.f32 %v1558_v26, %v7529_v37  ;;  %3118 = vmatprep.subr.bf16.mxu0 %v6324_v42  ;;  %v6334_v16 = vld [vmem:[%s8430_s3 + $0x3a0] ss:$16 sps:$4 sm:$0xff]   ;;  %v6339_v19 = vld [vmem:[%s8430_s3 + $0x1e4] ss:$16 sps:$4 sm:$0xff]  }
 0x195   : > { %v1653_v34 = vmax.f32 %v7614_v25, %v7619_v29  ;;  %2789 = vmatpush1.bf16.msra.mxu1 %v6331_v44  ;;  %v6342_v25 = vld [vmem:[%s8430_s3 + $0x3c4] ss:$16 sps:$4 sm:$0xff]  }
 0x196   : > { %3119 = vmatpush1.bf16.msra.mxu0 %v6322_v49  ;;  %2790 = vmatprep.subr.bf16.mxu1 %v6339_v19  ;;  %v6357_v19 = vld [vmem:[%s8430_s3 + $0x14c] ss:$16 sps:$4 sm:$0xff]  }
 0x197   : > { %3120 = vmatprep.subr.bf16.mxu0 %v6330_v60 }
 0x19c   : > { %v1595_v62 = vpop.f32.mrb[8].mxu1 }
 0x19d   : > { %v1597_v36 = vpop.f32.mrb[9].mxu1 }
 0x19e   : > { %v1654_v7 = vmax.f32 %v1595_v62, %v1597_v36  ;;  %v1599_v48 = vpop.f32.mrb[10].mxu1  ;;  %v6337_v36 = vld [vmem:[%s8430_s3 + $0x1e0] ss:$16 sps:$4 sm:$0xff]  }
 0x19f   : > { %v1601_v1 = vpop.f32.mrb[11].mxu1  ;;  %2791 = vmatpush1.bf16.msra.mxu1 %v6337_v36 }
 0x1a0   : > { %v1660_v4 = vmax.f32 %v1648_v50, %v1654_v7  ;;  %v1655_v5 = vmax.f32 %v1599_v48, %v1601_v1  ;;  %v6345_v7 = vld [vmem:[%s8430_s3 + $0x10c] ss:$16 sps:$4 sm:$0xff]   ;;  %v6348_v1 = vld [vmem:[%s8430_s3 + $0x3e4] ss:$16 sps:$4 sm:$0xff]  }
 0x1a1   : > { %2829 = vmatprep.subr.bf16.mxu1 %v6345_v7  ;;  %v6360_v7 = vld [vmem:[%s8430_s3 + $0x524] ss:$16 sps:$4 sm:$0xff]  }
 0x1a2   : > { %v1673_v3 = vadd.f32 %v7644_v11, %v1660_v4  ;;  %v1661_v8 = vmax.f32 %v1649_v54, %v1655_v5  ;;  %v6354_v4 = vld [vmem:[%s8430_s3 + $0x504] ss:$16 sps:$4 sm:$0xff]  }
 0x1a4   : > { %v1674_v22 = vadd.f32 %v7644_v11, %v1661_v8  ;;  %v1605_v23 = vpop.f32.mrb[12].mxu1  ;;  %v1679_v31 = vmax.f32 %v1673_v3, 0.0 }
 0x1a5   : > { %v1607_v28 = vpop.f32.mrb[13].mxu1 }
 0x1a6   : > { %v1680_v33 = vmax.f32 %v1674_v22, 0.0  ;;  %v1656_v35 = vmax.f32 %v1605_v23, %v1607_v28  ;;  %v1609_v37 = vpop.f32.mrb[14].mxu1 }
 0x1a7   : > { %v1611_v41 = vpop.f32.mrb[15].mxu1 }
 0x1a8   : > { %v7681_v43 = vpack.c.bf16 %v1680_v33, %v1679_v31  ;;  %v1662_v45 = vmax.f32 %v1650_v6, %v1656_v35  ;;  %v1657_v46 = vmax.f32 %v1609_v37, %v1611_v41 }
 0x1aa   : > { %v1675_v50 = vadd.f32 %v7644_v11, %v1662_v45  ;;  %v1663_v51 = vmax.f32 %v1651_v12, %v1657_v46  ;;  %v6328_v12 = vld [vmem:[%s8430_s3 + $0x380] ss:$16 sps:$4 sm:$0xff]  }
 0x1ab   : > { %3121 = vmatpush1.bf16.msra.mxu0 %v6328_v12 }
 0x1ac   : > { %v1681_v54 = vmax.f32 %v1675_v50, 0.0  ;;  %v1676_v55 = vadd.f32 %v7644_v11, %v1663_v51  ;;  %v1615_v57 = vpop.f32.mrb[16].mxu1  ;;  %3122 = vmatprep.subr.bf16.mxu0 %v6336_v53  ;;  %v6349_v53 = vld [vmem:[%s8430_s3 + $0x128] ss:$16 sps:$4 sm:$0xff]  }
 0x1ad   : > { %v1617_v59 = vpop.f32.mrb[17].mxu1 }
 0x1ae   : > { %v7700_v61 = vpack.c.bf16 %v1681_v54, %v1680_v33  ;;  %v1682_v63 = vmax.f32 %v1676_v55, 0.0  ;;  %v1658_v6 = vmax.f32 %v1615_v57, %v1617_v59  ;;  %v1619_v9 = vpop.f32.mrb[18].mxu1 }
 0x1af   : > { %v1621_v14 = vpop.f32.mrb[19].mxu1  ;;  %3123 = vmatpush1.bf16.msra.mxu0 %v6334_v16 }
 0x1b0   : > { %v7708_v20 = vpack.c.bf16 %v1682_v63, %v1681_v54  ;;  %v1664_v26 = vmax.f32 %v1652_v27, %v1658_v6  ;;  %v1659_v38 = vmax.f32 %v1619_v9, %v1621_v14  ;;  %3124 = vmatprep.subr.bf16.mxu0 %v6342_v25  ;;  %v6343_v9 = vld [vmem:[%s8430_s3 + $0x108] ss:$16 sps:$4 sm:$0xff]  }
 0x1b2   : > { %v1677_v62 = vadd.f32 %v7644_v11, %v1664_v26  ;;  %v1665_v47 = vmax.f32 %v1653_v34, %v1659_v38  ;;  %v6340_v34 = vld [vmem:[%s8430_s3 + $0x3c0] ss:$16 sps:$4 sm:$0xff]   ;;  %v6351_v26 = vld [vmem:[%s8430_s3 + $0x12c] ss:$16 sps:$4 sm:$0xff]  }
 0x1b3   : > { %3125 = vmatpush1.bf16.msra.mxu0 %v6340_v34 }
 0x1b4   : > { %v1683_v27 = vmax.f32 %v1677_v62, 0.0  ;;  %v1678_v18 = vadd.f32 %v7644_v11, %v1665_v47  ;;  %3126 = vmatprep.subr.bf16.mxu0 %v6348_v1 }
 0x1b6   : > { %v1684_v29 = vmax.f32 %v1678_v18, 0.0  ;;  %v7739_v56 = vpack.c.bf16 %v1683_v27, %v1682_v63  ;;  %v6352_v18 = vld [vmem:[%s8430_s3 + $0x500] ss:$16 sps:$4 sm:$0xff]  }
 0x1b7   : > { %3127 = vmatpush1.bf16.msra.mxu0 %v6346_v21  ;;  %v6355_v21 = vld [vmem:[%s8430_s3 + $0x148] ss:$16 sps:$4 sm:$0xff]  }
 0x1b8   : > { %v7744_v48 = vpack.c.bf16 %v1684_v29, %v1683_v27  ;;  %3446 = vmatprep.subr.bf16.mxu0 %v6354_v4 }
 0x20f   : > { %v2401_v5 = vpop.f32.mrb[12].mxu0 }
 0x210   : > { %v2403_v15 = vpop.f32.mrb[13].mxu0 }
 0x211   : > { %v2517_v2 = vmax.f32 %v2401_v5, %v2403_v15  ;;  %v2405_v3 = vpop.f32.mrb[14].mxu0 }
 0x212   : > { %v2407_v8 = vpop.f32.mrb[15].mxu0 }
 0x213   : > { %v2518_v10 = vmax.f32 %v2405_v3, %v2407_v8  ;;  %v6358_v3 = vld [vmem:[%s8430_s3 + $0x520] ss:$16 sps:$4 sm:$0xff]  }
 0x217   : > { %v2411_v13 = vpop.f32.mrb[16].mxu0 }
 0x218   : > { %v2413_v22 = vpop.f32.mrb[17].mxu0 }
 0x219   : > { %v2519_v23 = vmax.f32 %v2411_v13, %v2413_v22  ;;  %v2415_v24 = vpop.f32.mrb[18].mxu0  ;;  %v6366_v13 = vld [vmem:[%s8430_s3 + $0x544] ss:$16 sps:$4 sm:$0xff]   ;;  %v6361_v22 = vld [vmem:[%s8430_s3 + $0x168] ss:$16 sps:$4 sm:$0xff]  }
 0x21a   : > { %v2417_v30 = vpop.f32.mrb[19].mxu0 }
 0x21b   : > { %v2520_v31 = vmax.f32 %v2415_v24, %v2417_v30  ;;  %v6369_v30 = vld [vmem:[%s8430_s3 + $0x18c] ss:$16 sps:$4 sm:$0xff]  }
 0x21f   : > { %v2421_v28 = vpop.f32.mrb[20].mxu0 }
 0x220   : > { %v2423_v32 = vpop.f32.mrb[21].mxu0 }
 0x221   : > { %v2521_v33 = vmax.f32 %v2421_v28, %v2423_v32  ;;  %v2425_v35 = vpop.f32.mrb[22].mxu0 }
 0x222   : > { %v2427_v37 = vpop.f32.mrb[23].mxu0 }
 0x223   : > { %v2522_v39 = vmax.f32 %v2425_v35, %v2427_v37  ;;  %v6375_v35 = vld [vmem:[%s8430_s3 + $0x1ac] ss:$16 sps:$4 sm:$0xff]  }
 0x22c   : > { %v2464_v40 = vpop.f32.mrb[20].mxu1 }
 0x22d   : > { %v2466_v41 = vpop.f32.mrb[21].mxu1 }
 0x22e   : > { %v2523_v42 = vmax.f32 %v2464_v40, %v2466_v41  ;;  %v2468_v45 = vpop.f32.mrb[22].mxu1  ;;  %v6378_v40 = vld [vmem:[%s8430_s3 + $0x584] ss:$16 sps:$4 sm:$0xff]   ;;  %v6373_v41 = vld [vmem:[%s8430_s3 + $0x1a8] ss:$16 sps:$4 sm:$0xff]  }
 0x22f   : > { %v2470_v46 = vpop.f32.mrb[23].mxu1 }
 0x230   : > { %v2529_v49 = vmax.f32 %v2517_v2, %v2523_v42  ;;  %v2524_v50 = vmax.f32 %v2468_v45, %v2470_v46  ;;  %v6363_v2 = vld [vmem:[%s8430_s3 + $0x16c] ss:$16 sps:$4 sm:$0xff]   ;;  %v6376_v45 = vld [vmem:[%s8430_s3 + $0x580] ss:$16 sps:$4 sm:$0xff]   ;;  %v6384_v46 = vld [vmem:[%s8430_s3 + $0x5a4] ss:$16 sps:$4 sm:$0xff]  }
 0x231   : > { %v6381_v42 = vld [vmem:[%s8430_s3 + $0x1cc] ss:$16 sps:$4 sm:$0xff]  }
 0x232   : > { %v2535_v51 = vadd.f32 %v7644_v11, %v2529_v49  ;;  %v2530_v52 = vmax.f32 %v2518_v10, %v2524_v50  ;;  %v6379_v49 = vld [vmem:[%s8430_s3 + $0x1c8] ss:$16 sps:$4 sm:$0xff]   ;;  %v6387_v50 = vld [vmem:[%s8430_s3 + $0x1ec] ss:$16 sps:$4 sm:$0xff]  }
 0x234   : > { %v2536_v54 = vadd.f32 %v7644_v11, %v2530_v52  ;;  %v2474_v55 = vpop.f32.mrb[24].mxu1  ;;  %v2541_v58 = vmax.f32 %v2535_v51, 0.0  ;;  %v6382_v51 = vld [vmem:[%s8430_s3 + $0x5a0] ss:$16 sps:$4 sm:$0xff]   ;;  %v6390_v52 = vld [vmem:[%s8430_s3 + $0x5c4] ss:$16 sps:$4 sm:$0xff]  }
 0x235   : > { %v2476_v57 = vpop.f32.mrb[25].mxu1 }
 0x236   : > { %v2542_v59 = vmax.f32 %v2536_v54, 0.0  ;;  %v2525_v60 = vmax.f32 %v2474_v55, %v2476_v57  ;;  %v2478_v63 = vpop.f32.mrb[26].mxu1  ;;  %v6385_v54 = vld [vmem:[%s8430_s3 + $0x1e8] ss:$16 sps:$4 sm:$0xff]   ;;  %v6393_v55 = vld [vmem:[%s8430_s3 + $0x30c] ss:$16 sps:$4 sm:$0xff]  }
 0x237   : > { %v2480_v6 = vpop.f32.mrb[27].mxu1  ;;  %v6388_v57 = vld [vmem:[%s8430_s3 + $0x5c0] ss:$16 sps:$4 sm:$0xff]  }
 0x238   : > { %v7760_v12 = vpack.c.bf16 %v2542_v59, %v2541_v58  ;;  %v2531_v14 = vmax.f32 %v2519_v23, %v2525_v60  ;;  %v2526_v17 = vmax.f32 %v2478_v63, %v2480_v6  ;;  %v6396_v58 = vld [vmem:[%s8430_s3 + $0x5e4] ss:$16 sps:$4 sm:$0xff]   ;;  %v6399_v60 = vld [vmem:[%s8430_s3 + $0x32c] ss:$16 sps:$4 sm:$0xff]   ;;  %v6394_v63 = vld [vmem:[%s8430_s3 + $0x5e0] ss:$16 sps:$4 sm:$0xff]  }
 0x239   : > { %v6402_v6 = vld [vmem:[%s8430_s3 + $0x4] ss:$16 sps:$4 sm:$0xff]  }
 0x23a   : > { %v2537_v38 = vadd.f32 %v7644_v11, %v2531_v14  ;;  %v2532_v44 = vmax.f32 %v2520_v31, %v2526_v17  ;;  %2809 = vmatmul.mubr.bf16.vlgmr.msra.gmra.mrb[32].mxu1 %v7760_v12  ;;  %v6364_v31 = vld [vmem:[%s8430_s3 + $0x540] ss:$16 sps:$4 sm:$0xff]   ;;  %v6405_v14 = vld [vmem:[%s8430_s3 + $0x34c] ss:$16 sps:$4 sm:$0xff]   ;;  %v6408_v17 = vld [vmem:[%s8430_s3 + $0x24] ss:$16 sps:$4 sm:$0xff]  }
 0x23b   : > { %2830 = vmatpush1.bf16.msra.mxu1 %v6343_v9  ;;  %2818 = vmatprep.mubr.bf16.mxu1 %v6733_v0  ;;  %v6397_v9 = vld [vmem:[%s8430_s3 + $0x328] ss:$16 sps:$4 sm:$0xff]  }
 0x23c   : > { %v2543_v62 = vmax.f32 %v2537_v38, 0.0  ;;  %v2538_v47 = vadd.f32 %v7644_v11, %v2532_v44  ;;  %v2484_v16 = vpop.f32.mrb[28].mxu1  ;;  %2831 = vmatprep.subr.bf16.mxu1 %v6351_v26  ;;  %v6403_v26 = vld [vmem:[%s8430_s3 + $0x348] ss:$16 sps:$4 sm:$0xff]   ;;  %v6411_v38 = vld [vmem:[%s8430_s3 + $0x36c] ss:$16 sps:$4 sm:$0xff]  }
 0x23d   : > { %v2486_v27 = vpop.f32.mrb[29].mxu1  ;;  %v6406_v44 = vld [vmem:[%s8430_s3 + $0x20] ss:$16 sps:$4 sm:$0xff]  }
 0x23e   : > { %v7778_v36 = vpack.c.bf16 %v2543_v62, %v2542_v59  ;;  %v2544_v25 = vmax.f32 %v2538_v47, 0.0  ;;  %v2527_v29 = vmax.f32 %v2484_v16, %v2486_v27  ;;  %v2488_v34 = vpop.f32.mrb[30].mxu1  ;;  %v6391_v59 = vld [vmem:[%s8430_s3 + $0x308] ss:$16 sps:$4 sm:$0xff]   ;;  %v6417_v47 = vld [vmem:[%s8430_s3 + $0x38c] ss:$16 sps:$4 sm:$0xff]  }
 0x23f   : > { %2832 = vmatpush1.bf16.msra.mxu1 %v6349_v53  ;;  %v2490_v1 = vpop.f32.mrb[31].mxu1  ;;  %v6414_v53 = vld [vmem:[%s8430_s3 + $0x44] ss:$16 sps:$4 sm:$0xff]   ;;  %v6412_v16 = vld [vmem:[%s8430_s3 + $0x40] ss:$16 sps:$4 sm:$0xff]  }
 0x240   : > { %v7786_v4 = vpack.c.bf16 %v2544_v25, %v2543_v62  ;;  %v2533_v5 = vmax.f32 %v2521_v33, %v2527_v29  ;;  %v2528_v15 = vmax.f32 %v2488_v34, %v2490_v1  ;;  %3145 = vmatmul.mubr.bf16.vlgmr.msra.gmra.mrb[24].mxu0 %v7778_v36  ;;  %2833 = vmatprep.subr.bf16.mxu1 %v6357_v19  ;;  %v6372_v33 = vld [vmem:[%s8430_s3 + $0x564] ss:$16 sps:$4 sm:$0xff]   ;;  %v6409_v62 = vld [vmem:[%s8430_s3 + $0x368] ss:$16 sps:$4 sm:$0xff]   ;;  %v6424_v1 = vld [vmem:[%s8430_s3 + $0x80] ss:$16 sps:$4 sm:$0xff]  }
 0x241   : > { %3447 = vmatpush1.bf16.msra.mxu0 %v6352_v18  ;;  %3154 = vmatprep.mubr.bf16.mxu0 %v6733_v0  ;;  %v6420_v19 = vld [vmem:[%s8430_s3 + $0x64] ss:$16 sps:$4 sm:$0xff]   ;;  %v6415_v27 = vld [vmem:[%s8430_s3 + $0x388] ss:$16 sps:$4 sm:$0xff]   ;;  %v6423_v18 = vld [vmem:[%s8430_s3 + $0x3ac] ss:$16 sps:$4 sm:$0xff]  }
 0x242   : > { %v2539_v8 = vadd.f32 %v7644_v11, %v2533_v5  ;;  %v2534_v10 = vmax.f32 %v2522_v39, %v2528_v15  ;;  %2819 = vmatmul.mubr.bf16.gmra.mrb[36].mxu1 %v7786_v4  ;;  %3448 = vmatprep.subr.bf16.mxu0 %v6360_v7  ;;  %v6370_v39 = vld [vmem:[%s8430_s3 + $0x560] ss:$16 sps:$4 sm:$0xff]   ;;  %v6426_v29 = vld [vmem:[%s8430_s3 + $0x84] ss:$16 sps:$4 sm:$0xff]   ;;  %v6421_v34 = vld [vmem:[%s8430_s3 + $0x3a8] ss:$16 sps:$4 sm:$0xff]  }
 0x243   : > { %2834 = vmatpush1.bf16.msra.mxu1 %v6355_v21  ;;  %2861 = vmatprep.mubr.bf16.mxu1 %v6733_v0  ;;  %v6429_v7 = vld [vmem:[%s8430_s3 + $0x3cc] ss:$16 sps:$4 sm:$0xff]   ;;  %v6432_v21 = vld [vmem:[%s8430_s3 + $0xa4] ss:$16 sps:$4 sm:$0xff]   ;;  %v6427_v5 = vld [vmem:[%s8430_s3 + $0x3c8] ss:$16 sps:$4 sm:$0xff]  }
 0x244   : > { %v2545_v23 = vmax.f32 %v2539_v8, 0.0  ;;  %v2540_v24 = vadd.f32 %v7644_v11, %v2534_v10  ;;  %2835 = vmatprep.subr.bf16.mxu1 %v6363_v2  ;;  %v6367_v11 = vld [vmem:[%s8430_s3 + $0x188] ss:$16 sps:$4 sm:$0xff]   ;;  %v6435_v15 = vld [vmem:[%s8430_s3 + $0x3ec] ss:$16 sps:$4 sm:$0xff]  }
 0x245   : > { %3449 = vmatpush1.bf16.msra.mxu0 %v6358_v3  ;;  %v6430_v2 = vld [vmem:[%s8430_s3 + $0xa0] ss:$16 sps:$4 sm:$0xff]   ;;  %v6438_v3 = vld [vmem:[%s8430_s3 + $0xc4] ss:$16 sps:$4 sm:$0xff]   ;;  %v6433_v8 = vld [vmem:[%s8430_s3 + $0x3e8] ss:$16 sps:$4 sm:$0xff]  }
 0x246   : > { %v2546_v28 = vmax.f32 %v2540_v24, 0.0  ;;  %3450 = vmatprep.subr.bf16.mxu0 %v6366_v13  ;;  %v7812_v32 = vpack.c.bf16 %v2545_v23, %v2544_v25  ;;  %v6418_v25 = vld [vmem:[%s8430_s3 + $0x60] ss:$16 sps:$4 sm:$0xff]   ;;  %v6441_v10 = vld [vmem:[%s8430_s3 + $0x50c] ss:$16 sps:$4 sm:$0xff]  }
 0x247   : > { %2836 = vmatpush1.bf16.msra.mxu1 %v6361_v22  ;;  %v6436_v13 = vld [vmem:[%s8430_s3 + $0xc0] ss:$16 sps:$4 sm:$0xff]   ;;  %v6444_v22 = vld [vmem:[%s8430_s3 + $0xe4] ss:$16 sps:$4 sm:$0xff]   ;;  %v6447_v24 = vld [vmem:[%s8430_s3 + $0x52c] ss:$16 sps:$4 sm:$0xff]  }
 0x248   : > { %3155 = vmatmul.mubr.bf16.gmra.mrb[28].mxu0 %v7812_v32  ;;  %2837 = vmatprep.subr.bf16.mxu1 %v6369_v30  ;;  %v7824_v37 = vpack.c.bf16 %v2546_v28, %v2545_v23  ;;  %v6439_v23 = vld [vmem:[%s8430_s3 + $0x508] ss:$16 sps:$4 sm:$0xff]   ;;  %v6442_v30 = vld [vmem:[%s8430_s3 + $0xe0] ss:$16 sps:$4 sm:$0xff]  }
 0x249   : > { %3451 = vmatpush1.bf16.msra.mxu0 %v6364_v31  ;;  %3478 = vmatprep.mubr.bf16.mxu0 %v6733_v0  ;;  %v6450_v31 = vld [vmem:[%s8430_s3 + $0x204] ss:$16 sps:$4 sm:$0xff]   ;;  %v6445_v28 = vld [vmem:[%s8430_s3 + $0x528] ss:$16 sps:$4 sm:$0xff]  }
 0x24a   : > { %3452 = vmatprep.subr.bf16.mxu0 %v6372_v33  ;;  %v6453_v33 = vld [vmem:[%s8430_s3 + $0x54c] ss:$16 sps:$4 sm:$0xff]  }
 0x24b   : > { %2838 = vmatpush1.bf16.msra.mxu1 %v6367_v11  ;;  %v6456_v11 = vld [vmem:[%s8430_s3 + $0x224] ss:$16 sps:$4 sm:$0xff]  }
 0x24c   : > { %2839 = vmatprep.subr.bf16.mxu1 %v6375_v35  ;;  %v6451_v35 = vld [vmem:[%s8430_s3 + $0x548] ss:$16 sps:$4 sm:$0xff]  }
 0x24d   : > { %3453 = vmatpush1.bf16.msra.mxu0 %v6370_v39  ;;  %v6459_v39 = vld [vmem:[%s8430_s3 + $0x56c] ss:$16 sps:$4 sm:$0xff]  }
 0x24e   : > { %3454 = vmatprep.subr.bf16.mxu0 %v6378_v40  ;;  %v6454_v40 = vld [vmem:[%s8430_s3 + $0x220] ss:$16 sps:$4 sm:$0xff]  }
 0x24f   : > { %2840 = vmatpush1.bf16.msra.mxu1 %v6373_v41  ;;  %v6462_v41 = vld [vmem:[%s8430_s3 + $0x244] ss:$16 sps:$4 sm:$0xff]  }
 0x250   : > { %2841 = vmatprep.subr.bf16.mxu1 %v6381_v42  ;;  %v6457_v42 = vld [vmem:[%s8430_s3 + $0x568] ss:$16 sps:$4 sm:$0xff]  }
 0x251   : > { %3455 = vmatpush1.bf16.msra.mxu0 %v6376_v45  ;;  %v6465_v45 = vld [vmem:[%s8430_s3 + $0x58c] ss:$16 sps:$4 sm:$0xff]  }
 0x252   : > { %3456 = vmatprep.subr.bf16.mxu0 %v6384_v46  ;;  %v6468_v46 = vld [vmem:[%s8430_s3 + $0x264] ss:$16 sps:$4 sm:$0xff]  }
 0x253   : > { %2842 = vmatpush1.bf16.msra.mxu1 %v6379_v49  ;;  %v6463_v49 = vld [vmem:[%s8430_s3 + $0x588] ss:$16 sps:$4 sm:$0xff]  }
 0x254   : > { %2843 = vmatprep.subr.bf16.mxu1 %v6387_v50  ;;  %v6471_v50 = vld [vmem:[%s8430_s3 + $0x5ac] ss:$16 sps:$4 sm:$0xff]  }
 0x255   : > { %3457 = vmatpush1.bf16.msra.mxu0 %v6382_v51  ;;  %v6466_v51 = vld [vmem:[%s8430_s3 + $0x260] ss:$16 sps:$4 sm:$0xff]  }
 0x256   : > { %3458 = vmatprep.subr.bf16.mxu0 %v6390_v52  ;;  %v6474_v52 = vld [vmem:[%s8430_s3 + $0x284] ss:$16 sps:$4 sm:$0xff]  }
 0x257   : > { %2844 = vmatpush1.bf16.msra.mxu1 %v6385_v54  ;;  %v6469_v54 = vld [vmem:[%s8430_s3 + $0x5a8] ss:$16 sps:$4 sm:$0xff]  }
 0x258   : > { %3165 = vmatprep.subr.bf16.mxu1 %v6393_v55  ;;  %v6477_v55 = vld [vmem:[%s8430_s3 + $0x5cc] ss:$16 sps:$4 sm:$0xff]  }
 0x259   : > { %3459 = vmatpush1.bf16.msra.mxu0 %v6388_v57  ;;  %v6472_v57 = vld [vmem:[%s8430_s3 + $0x280] ss:$16 sps:$4 sm:$0xff]  }
 0x25a   : > { %2862 = vmatmul.mubr.bf16.vlgmr.msra.gmra.mrb[40].mxu1 %v7760_v12  ;;  %3460 = vmatprep.subr.bf16.mxu0 %v6396_v58  ;;  %v6400_v12 = vld [vmem:[%s8430_s3] ss:$16 sps:$4 sm:$0xff]   ;;  %v6480_v58 = vld [vmem:[%s8430_s3 + $0x2a4] ss:$16 sps:$4 sm:$0xff]  }
 0x25b   : > { %3166 = vmatpush1.bf16.msra.mxu1 %v6391_v59  ;;  %2871 = vmatprep.mubr.bf16.mxu1 %v6733_v0  ;;  %v6475_v59 = vld [vmem:[%s8430_s3 + $0x5c8] ss:$16 sps:$4 sm:$0xff]  }
 0x25c   : > { %3167 = vmatprep.subr.bf16.mxu1 %v6399_v60  ;;  %v6483_v60 = vld [vmem:[%s8430_s3 + $0x5ec] ss:$16 sps:$4 sm:$0xff]  }
 0x25d   : > { %3461 = vmatpush1.bf16.msra.mxu0 %v6394_v63  ;;  %v6478_v63 = vld [vmem:[%s8430_s3 + $0x2a0] ss:$16 sps:$4 sm:$0xff]  }
 0x25e   : > { %3712 = vmatprep.subr.bf16.mxu0 %v6402_v6  ;;  %v6486_v6 = vld [vmem:[%s8430_s3 + $0x2c4] ss:$16 sps:$4 sm:$0xff]  }
 0x25f   : > { %3168 = vmatpush1.bf16.msra.mxu1 %v6397_v9  ;;  %v6481_v9 = vld [vmem:[%s8430_s3 + $0x5e8] ss:$16 sps:$4 sm:$0xff]  }
 0x260   : > { %3479 = vmatmul.mubr.bf16.vlgmr.msra.gmra.mrb[24].mxu0 %v7786_v4  ;;  %3169 = vmatprep.subr.bf16.mxu1 %v6405_v14  ;;  %v6489_v14 = vld [vmem:[%s8430_s3 + $0xc] ss:$16 sps:$4 sm:$0xff]  }
 0x261   : > { %3713 = vmatpush1.bf16.msra.mxu0 %v6400_v12  ;;  %3488 = vmatprep.mubr.bf16.mxu0 %v6733_v0  ;;  %v6484_v12 = vld [vmem:[%s8430_s3 + $0x2c0] ss:$16 sps:$4 sm:$0xff]  }
 0x262   : > { %2872 = vmatmul.mubr.bf16.gmra.mrb[44].mxu1 %v7786_v4  ;;  %3714 = vmatprep.subr.bf16.mxu0 %v6408_v17  ;;  %v6492_v17 = vld [vmem:[%s8430_s3 + $0x2e4] ss:$16 sps:$4 sm:$0xff]  }
 0x263   : > { %3170 = vmatpush1.bf16.msra.mxu1 %v6403_v26  ;;  %3197 = vmatprep.mubr.bf16.mxu1 %v6733_v0  ;;  %v6487_v26 = vld [vmem:[%s8430_s3 + $0x8] ss:$16 sps:$4 sm:$0xff]  }
 0x264   : > { %3171 = vmatprep.subr.bf16.mxu1 %v6411_v38  ;;  %v6495_v38 = vld [vmem:[%s8430_s3 + $0x2c] ss:$16 sps:$4 sm:$0xff]  }
 0x265   : > { %3715 = vmatpush1.bf16.msra.mxu0 %v6406_v44  ;;  %v6490_v44 = vld [vmem:[%s8430_s3 + $0x2e0] ss:$16 sps:$4 sm:$0xff]  }
 0x266   : > { %3716 = vmatprep.subr.bf16.mxu0 %v6414_v53  ;;  %v6498_v53 = vld [vmem:[%s8430_s3 + $0x404] ss:$16 sps:$4 sm:$0xff]  }
 0x267   : > { %3172 = vmatpush1.bf16.msra.mxu1 %v6409_v62  ;;  %v6493_v62 = vld [vmem:[%s8430_s3 + $0x28] ss:$16 sps:$4 sm:$0xff]  }
 0x268   : > { %3489 = vmatmul.mubr.bf16.gmra.mrb[28].mxu0 %v7824_v37  ;;  %3173 = vmatprep.subr.bf16.mxu1 %v6417_v47  ;;  %v6501_v47 = vld [vmem:[%s8430_s3 + $0x4c] ss:$16 sps:$4 sm:$0xff]  }
 0x269   : > { %3717 = vmatpush1.bf16.msra.mxu0 %v6412_v16  ;;  %3744 = vmatprep.mubr.bf16.mxu0 %v6733_v0  ;;  %v6504_v16 = vld [vmem:[%s8430_s3 + $0x424] ss:$16 sps:$4 sm:$0xff]  }
 0x26a   : > { %3718 = vmatprep.subr.bf16.mxu0 %v6420_v19  ;;  %v6499_v19 = vld [vmem:[%s8430_s3 + $0x48] ss:$16 sps:$4 sm:$0xff]  }
 0x26b   : > { %3174 = vmatpush1.bf16.msra.mxu1 %v6415_v27  ;;  %v6507_v27 = vld [vmem:[%s8430_s3 + $0x6c] ss:$16 sps:$4 sm:$0xff]  }
 0x26c   : > { %3175 = vmatprep.subr.bf16.mxu1 %v6423_v18  ;;  %v6502_v18 = vld [vmem:[%s8430_s3 + $0x420] ss:$16 sps:$4 sm:$0xff]  }
 0x26d   : > { %3719 = vmatpush1.bf16.msra.mxu0 %v6418_v25  ;;  %v6510_v25 = vld [vmem:[%s8430_s3 + $0x444] ss:$16 sps:$4 sm:$0xff]  }
 0x26e   : > { %3720 = vmatprep.subr.bf16.mxu0 %v6426_v29  ;;  %v6505_v29 = vld [vmem:[%s8430_s3 + $0x68] ss:$16 sps:$4 sm:$0xff]  }
 0x26f   : > { %3176 = vmatpush1.bf16.msra.mxu1 %v6421_v34  ;;  %v6513_v34 = vld [vmem:[%s8430_s3 + $0x8c] ss:$16 sps:$4 sm:$0xff]  }
 0x270   : > { %3177 = vmatprep.subr.bf16.mxu1 %v6429_v7  ;;  %v6516_v7 = vld [vmem:[%s8430_s3 + $0x464] ss:$16 sps:$4 sm:$0xff]  }
 0x271   : > { %3721 = vmatpush1.bf16.msra.mxu0 %v6424_v1  ;;  %v6511_v1 = vld [vmem:[%s8430_s3 + $0x88] ss:$16 sps:$4 sm:$0xff]  }
 0x272   : > { %3722 = vmatprep.subr.bf16.mxu0 %v6432_v21  ;;  %v6519_v21 = vld [vmem:[%s8430_s3 + $0xac] ss:$16 sps:$4 sm:$0xff]  }
 0x273   : > { %3178 = vmatpush1.bf16.msra.mxu1 %v6427_v5  ;;  %v6514_v5 = vld [vmem:[%s8430_s3 + $0x460] ss:$16 sps:$4 sm:$0xff]  }
 0x274   : > { %3179 = vmatprep.subr.bf16.mxu1 %v6435_v15  ;;  %v6522_v15 = vld [vmem:[%s8430_s3 + $0x484] ss:$16 sps:$4 sm:$0xff]  }
 0x275   : > { %3723 = vmatpush1.bf16.msra.mxu0 %v6430_v2  ;;  %v6517_v2 = vld [vmem:[%s8430_s3 + $0xa8] ss:$16 sps:$4 sm:$0xff]  }
 0x276   : > { %3724 = vmatprep.subr.bf16.mxu0 %v6438_v3  ;;  %v6525_v3 = vld [vmem:[%s8430_s3 + $0xcc] ss:$16 sps:$4 sm:$0xff]  }
 0x277   : > { %3180 = vmatpush1.bf16.msra.mxu1 %v6433_v8  ;;  %v6520_v8 = vld [vmem:[%s8430_s3 + $0x480] ss:$16 sps:$4 sm:$0xff]  }
 0x278   : > { %3499 = vmatprep.subr.bf16.mxu1 %v6441_v10  ;;  %v6528_v10 = vld [vmem:[%s8430_s3 + $0x4a4] ss:$16 sps:$4 sm:$0xff]  }
 0x279   : > { %3725 = vmatpush1.bf16.msra.mxu0 %v6436_v13  ;;  %v6523_v13 = vld [vmem:[%s8430_s3 + $0xc8] ss:$16 sps:$4 sm:$0xff]  }
 0x27a   : > { %3198 = vmatmul.mubr.bf16.vlgmr.msra.gmra.mrb[40].mxu1 %v7778_v36  ;;  %3726 = vmatprep.subr.bf16.mxu0 %v6444_v22  ;;  %v6448_v36 = vld [vmem:[%s8430_s3 + $0x200] ss:$16 sps:$4 sm:$0xff]   ;;  %v6531_v22 = vld [vmem:[%s8430_s3 + $0xec] ss:$16 sps:$4 sm:$0xff]  }
 0x27b   : > { %3500 = vmatpush1.bf16.msra.mxu1 %v6439_v23  ;;  %3207 = vmatprep.mubr.bf16.mxu1 %v6733_v0  ;;  %v6526_v23 = vld [vmem:[%s8430_s3 + $0x4a0] ss:$16 sps:$4 sm:$0xff]  }
 0x27c   : > { %3501 = vmatprep.subr.bf16.mxu1 %v6447_v24  ;;  %v6534_v24 = vld [vmem:[%s8430_s3 + $0x4c4] ss:$16 sps:$4 sm:$0xff]  }
 0x27d   : > { %3727 = vmatpush1.bf16.msra.mxu0 %v6442_v30  ;;  %v6529_v30 = vld [vmem:[%s8430_s3 + $0xe8] ss:$16 sps:$4 sm:$0xff]  }
 0x27e   : > { %3978 = vmatprep.subr.bf16.mxu0 %v6450_v31  ;;  %v6537_v31 = vld [vmem:[%s8430_s3 + $0x20c] ss:$16 sps:$4 sm:$0xff]  }
 0x27f   : > { %3502 = vmatpush1.bf16.msra.mxu1 %v6445_v28  ;;  %v6532_v28 = vld [vmem:[%s8430_s3 + $0x4c0] ss:$16 sps:$4 sm:$0xff]  }
 0x280   : > { %3745 = vmatmul.mubr.bf16.vlgmr.msra.gmra.mrb[24].mxu0 %v7681_v43  ;;  %3503 = vmatprep.subr.bf16.mxu1 %v6453_v33  ;;  %v6540_v33 = vld [vmem:[%s8430_s3 + $0x4e4] ss:$16 sps:$4 sm:$0xff]  }
 0x281   : > { %3979 = vmatpush1.bf16.msra.mxu0 %v6448_v36  ;;  %3754 = vmatprep.mubr.bf16.mxu0 %v6733_v0  ;;  %v6535_v36 = vld [vmem:[%s8430_s3 + $0x208] ss:$16 sps:$4 sm:$0xff]  }
 0x282   : > { %3208 = vmatmul.mubr.bf16.gmra.mrb[44].mxu1 %v7812_v32  ;;  %3980 = vmatprep.subr.bf16.mxu0 %v6456_v11  ;;  %v6460_v32 = vld [vmem:[%s8430_s3 + $0x240] ss:$16 sps:$4 sm:$0xff]   ;;  %v6543_v11 = vld [vmem:[%s8430_s3 + $0x22c] ss:$16 sps:$4 sm:$0xff]  }
 0x283   : > { %3504 = vmatpush1.bf16.msra.mxu1 %v6451_v35  ;;  %3531 = vmatprep.mubr.bf16.mxu1 %v6733_v0  ;;  %v6538_v35 = vld [vmem:[%s8430_s3 + $0x4e0] ss:$16 sps:$4 sm:$0xff]  }
 0x284   : > { %3505 = vmatprep.subr.bf16.mxu1 %v6459_v39  ;;  %v6541_v39 = vld [vmem:[%s8430_s3 + $0x228] ss:$16 sps:$4 sm:$0xff]  }
 0x285   : > { %3981 = vmatpush1.bf16.msra.mxu0 %v6454_v40  ;;  %v6546_v40 = vld [vmem:[%s8430_s3 + $0x24c] ss:$16 sps:$4 sm:$0xff]  }
 0x286   : > { %3982 = vmatprep.subr.bf16.mxu0 %v6462_v41  ;;  %v6544_v41 = vld [vmem:[%s8430_s3 + $0x248] ss:$16 sps:$4 sm:$0xff]  }
 0x287   : > { %3506 = vmatpush1.bf16.msra.mxu1 %v6457_v42  ;;  %v6547_v42 = vld [vmem:[%s8430_s3 + $0x268] ss:$16 sps:$4 sm:$0xff]  }
 0x288   : > { %3755 = vmatmul.mubr.bf16.gmra.mrb[28].mxu0 %v7708_v20  ;;  %3507 = vmatprep.subr.bf16.mxu1 %v6465_v45  ;;  %v6552_v45 = vld [vmem:[%s8430_s3 + $0x28c] ss:$16 sps:$4 sm:$0xff]  }
 0x289   : > { %3983 = vmatpush1.bf16.msra.mxu0 %v6460_v32  ;;  %4010 = vmatprep.mubr.bf16.mxu0 %v6733_v0  ;;  %v6550_v32 = vld [vmem:[%s8430_s3 + $0x288] ss:$16 sps:$4 sm:$0xff]  }
 0x28a   : > { %3984 = vmatprep.subr.bf16.mxu0 %v6468_v46  ;;  %v6555_v46 = vld [vmem:[%s8430_s3 + $0x2ac] ss:$16 sps:$4 sm:$0xff]  }
 0x28b   : > { %3508 = vmatpush1.bf16.msra.mxu1 %v6463_v49  ;;  %v6553_v49 = vld [vmem:[%s8430_s3 + $0x2a8] ss:$16 sps:$4 sm:$0xff]  }
 0x28c   : > { %3509 = vmatprep.subr.bf16.mxu1 %v6471_v50  ;;  %v6558_v50 = vld [vmem:[%s8430_s3 + $0x2cc] ss:$16 sps:$4 sm:$0xff]  }
 0x28d   : > { %3985 = vmatpush1.bf16.msra.mxu0 %v6466_v51  ;;  %v6556_v51 = vld [vmem:[%s8430_s3 + $0x2c8] ss:$16 sps:$4 sm:$0xff]  }
 0x28e   : > { %3986 = vmatprep.subr.bf16.mxu0 %v6474_v52  ;;  %v6561_v52 = vld [vmem:[%s8430_s3 + $0x2ec] ss:$16 sps:$4 sm:$0xff]  }
 0x28f   : > { %3510 = vmatpush1.bf16.msra.mxu1 %v6469_v54  ;;  %v6559_v54 = vld [vmem:[%s8430_s3 + $0x2e8] ss:$16 sps:$4 sm:$0xff]  }
 0x290   : > { %3511 = vmatprep.subr.bf16.mxu1 %v6477_v55  ;;  %v6564_v55 = vld [vmem:[%s8430_s3 + $0x40c] ss:$16 sps:$4 sm:$0xff]  }
 0x291   : > { %3987 = vmatpush1.bf16.msra.mxu0 %v6472_v57  ;;  %v6562_v57 = vld [vmem:[%s8430_s3 + $0x408] ss:$16 sps:$4 sm:$0xff]  }
 0x292   : > { %3988 = vmatprep.subr.bf16.mxu0 %v6480_v58  ;;  %v6567_v58 = vld [vmem:[%s8430_s3 + $0x42c] ss:$16 sps:$4 sm:$0xff]  }
 0x293   : > { %3512 = vmatpush1.bf16.msra.mxu1 %v6475_v59  ;;  %v6565_v59 = vld [vmem:[%s8430_s3 + $0x428] ss:$16 sps:$4 sm:$0xff]  }
 0x294   : > { %3513 = vmatprep.subr.bf16.mxu1 %v6483_v60  ;;  %v6570_v60 = vld [vmem:[%s8430_s3 + $0x44c] ss:$16 sps:$4 sm:$0xff]  }
 0x295   : > { %3989 = vmatpush1.bf16.msra.mxu0 %v6478_v63  ;;  %v6568_v63 = vld [vmem:[%s8430_s3 + $0x448] ss:$16 sps:$4 sm:$0xff]  }
 0x296   : > { %3990 = vmatprep.subr.bf16.mxu0 %v6486_v6  ;;  %v6571_v6 = vld [vmem:[%s8430_s3 + $0x468] ss:$16 sps:$4 sm:$0xff]  }
 0x297   : > { %3514 = vmatpush1.bf16.msra.mxu1 %v6481_v9  ;;  %v6576_v9 = vld [vmem:[%s8430_s3 + $0x48c] ss:$16 sps:$4 sm:$0xff]  }
 0x298   : > { %3765 = vmatprep.subr.bf16.mxu1 %v6489_v14  ;;  %v6574_v14 = vld [vmem:[%s8430_s3 + $0x488] ss:$16 sps:$4 sm:$0xff]  }
 0x299   : > { %3991 = vmatpush1.bf16.msra.mxu0 %v6484_v12  ;;  %v6577_v12 = vld [vmem:[%s8430_s3 + $0x4a8] ss:$16 sps:$4 sm:$0xff]  }
 0x29a   : > { %3532 = vmatmul.mubr.bf16.vlgmr.msra.gmra.mrb[40].mxu1 %v7786_v4  ;;  %3992 = vmatprep.subr.bf16.mxu0 %v6492_v17  ;;  %v6496_v4 = vld [vmem:[%s8430_s3 + $0x400] ss:$16 sps:$4 sm:$0xff]   ;;  %v6582_v17 = vld [vmem:[%s8430_s3 + $0x4cc] ss:$16 sps:$4 sm:$0xff]  }
 0x29b   : > { %3766 = vmatpush1.bf16.msra.mxu1 %v6487_v26  ;;  %3541 = vmatprep.mubr.bf16.mxu1 %v6733_v0  ;;  %v6580_v26 = vld [vmem:[%s8430_s3 + $0x4c8] ss:$16 sps:$4 sm:$0xff]  }
 0x29c   : > { %3767 = vmatprep.subr.bf16.mxu1 %v6495_v38  ;;  %v6585_v38 = vld [vmem:[%s8430_s3 + $0x4ec] ss:$16 sps:$4 sm:$0xff]  }
 0x29d   : > { %3993 = vmatpush1.bf16.msra.mxu0 %v6490_v44  ;;  %v6583_v44 = vld [vmem:[%s8430_s3 + $0x4e8] ss:$16 sps:$4 sm:$0xff]  }
 0x29e   : > { %4260 = vmatprep.subr.bf16.mxu0 %v6498_v53 }
 0x29f   : > { %3768 = vmatpush1.bf16.msra.mxu1 %v6493_v62 }
 0x2a0   : > { %4011 = vmatmul.mubr.bf16.vlgmr.msra.gmra.mrb[24].mxu0 %v7700_v61  ;;  %3769 = vmatprep.subr.bf16.mxu1 %v6501_v47 }
 0x2a1   : > { %4261 = vmatpush1.bf16.msra.mxu0 %v6496_v4  ;;  %4020 = vmatprep.mubr.bf16.mxu0 %v6733_v0 }
 0x2a2   : > { %3542 = vmatmul.mubr.bf16.gmra.mrb[44].mxu1 %v7824_v37  ;;  %4262 = vmatprep.subr.bf16.mxu0 %v6504_v16  ;;  %v6508_v37 = vld [vmem:[%s8430_s3 + $0x440] ss:$16 sps:$4 sm:$0xff]  }
 0x2a3   : > { %3770 = vmatpush1.bf16.msra.mxu1 %v6499_v19  ;;  %3797 = vmatprep.mubr.bf16.mxu1 %v6733_v0 }
 0x2a4   : > { %3771 = vmatprep.subr.bf16.mxu1 %v6507_v27 }
 0x2a5   : > { %4263 = vmatpush1.bf16.msra.mxu0 %v6502_v18 }
 0x2a6   : > { %4264 = vmatprep.subr.bf16.mxu0 %v6510_v25  ;;  %v6586_v25 = vld [vmem:[#allocation2 + $0x40] sm:$0xff]  }
 0x2a7   : > { %3772 = vmatpush1.bf16.msra.mxu1 %v6505_v29  ;;  %v6734_v29 = vmov 0.0  }
 0x2a8   : > { %4021 = vmatmul.mubr.bf16.gmra.mrb[28].mxu0 %v7739_v56  ;;  %3773 = vmatprep.subr.bf16.mxu1 %v6513_v34  ;;  %v6590_v34 = vld [vmem:[#allocation2 + $0x60] sm:$0xff]  }
 0x2a9   : > { %4265 = vmatpush1.bf16.msra.mxu0 %v6508_v37  ;;  %4292 = vmatprep.mubr.bf16.mxu0 %v6733_v0  ;;  %v6591_v37 = vld [vmem:[#allocation2 + $0x68] sm:$0xff]  }
 0x2aa   : > { %4266 = vmatprep.subr.bf16.mxu0 %v6516_v7  ;;  %v6592_v7 = vld [vmem:[#allocation2 + $0x70] sm:$0xff]  }
 0x2ab   : > { %3774 = vmatpush1.bf16.msra.mxu1 %v6511_v1  ;;  %v6593_v1 = vld [vmem:[#allocation2 + $0x78] sm:$0xff]  }
 0x2ac   : > { %3775 = vmatprep.subr.bf16.mxu1 %v6519_v21 }
 0x2ad   : > { %4267 = vmatpush1.bf16.msra.mxu0 %v6514_v5 }
 0x2ae   : > { %4268 = vmatprep.subr.bf16.mxu0 %v6522_v15 }
 0x2af   : > { %3776 = vmatpush1.bf16.msra.mxu1 %v6517_v2 }
 0x2b0   : > { %3777 = vmatprep.subr.bf16.mxu1 %v6525_v3 }
 0x2b1   : > { %4269 = vmatpush1.bf16.msra.mxu0 %v6520_v8 }
 0x2b2   : > { %4270 = vmatprep.subr.bf16.mxu0 %v6528_v10 }
 0x2b3   : > { %3778 = vmatpush1.bf16.msra.mxu1 %v6523_v13 }
 0x2b4   : > { %3779 = vmatprep.subr.bf16.mxu1 %v6531_v22 }
 0x2b5   : > { %4271 = vmatpush1.bf16.msra.mxu0 %v6526_v23 }
 0x2b6   : > { %4272 = vmatprep.subr.bf16.mxu0 %v6534_v24 }
 0x2b7   : > { %3780 = vmatpush1.bf16.msra.mxu1 %v6529_v30 }
 0x2b8   : > { %4031 = vmatprep.subr.bf16.mxu1 %v6537_v31 }
 0x2b9   : > { %4273 = vmatpush1.bf16.msra.mxu0 %v6532_v28 }
 0x2ba   : > { %3798 = vmatmul.mubr.bf16.vlgmr.msra.gmra.mrb[40].mxu1 %v7681_v43  ;;  %4274 = vmatprep.subr.bf16.mxu0 %v6540_v33  ;;  %v6549_v43 = vld [vmem:[%s8430_s3 + $0x26c] ss:$16 sps:$4 sm:$0xff]  }
 0x2bb   : > { %4032 = vmatpush1.bf16.msra.mxu1 %v6535_v36  ;;  %3807 = vmatprep.mubr.bf16.mxu1 %v6733_v0 }
 0x2bc   : > { %4033 = vmatprep.subr.bf16.mxu1 %v6543_v11 }
 0x2bd   : > { %4275 = vmatpush1.bf16.msra.mxu0 %v6538_v35 }
 0x2be   : > { %5710 = vmatprep.subr.bf16.mxu0 %v6734_v29 }
 0x2bf   : > { %4034 = vmatpush1.bf16.msra.mxu1 %v6541_v39 }
 0x2c0   : > { %4293 = vmatmul.mubr.bf16.vlgmr.msra.gmra.mrb[24].mxu0 %v7708_v20  ;;  %4035 = vmatprep.subr.bf16.mxu1 %v6546_v40 }
 0x2c1   : > { %4302 = vmatprep.mubr.bf16.mxu0 %v6733_v0  ;;  %5711 = vmatpush3.bf16.msra.mxu0 %v6586_v25 }
 0x2c2   : > { %3808 = vmatmul.mubr.bf16.gmra.mrb[44].mxu1 %v7708_v20  ;;  %5712 = vmatprep.subr.bf16.mxu0 %v6734_v29 }
 0x2c3   : > { %4036 = vmatpush1.bf16.msra.mxu1 %v6544_v41  ;;  %4063 = vmatprep.mubr.bf16.mxu1 %v6733_v0  ;;  %v6618_v41 = vld [vmem:[%s8434_s7] sm:$0xff]  }
 0x2c4   : > { %4037 = vmatprep.subr.bf16.mxu1 %v6549_v43  ;;  %v6619_v43 = vld [vmem:[%s8434_s7 + $0x8] sm:$0xff]  }
 0x2c7   : > { %4038 = vmatpush1.bf16.msra.mxu1 %v6547_v42  ;;  %v6620_v42 = vld [vmem:[%s8434_s7 + $0x10] sm:$0xff]  }
 0x2c8   : > { %4303 = vmatmul.mubr.bf16.gmra.mrb[28].mxu0 %v7744_v48  ;;  %4039 = vmatprep.subr.bf16.mxu1 %v6552_v45  ;;  %v6621_v45 = vld [vmem:[%s8434_s7 + $0x18] sm:$0xff]  }
 0x2c9   : > { %5726 = vmatprep.mubr.msk.bf16.mxu0 %vm6735_vm2, %v6734_v29 }
 0x2cb   : > { %4040 = vmatpush1.bf16.msra.mxu1 %v6550_v32  ;;  %v6622_v32 = vld [vmem:[%s8434_s7 + $0x20] sm:$0xff]  }
 0x2cc   : > { %4041 = vmatprep.subr.bf16.mxu1 %v6555_v46 }
 0x2cf   : > { %4042 = vmatpush1.bf16.msra.mxu1 %v6553_v49  ;;  %v6623_v49 = vld [vmem:[%s8434_s7 + $0x28] sm:$0xff]  }
 0x2d0   : > { %4043 = vmatprep.subr.bf16.mxu1 %v6558_v50 }
 0x2d3   : > { %4044 = vmatpush1.bf16.msra.mxu1 %v6556_v51 }
 0x2d4   : > { %4045 = vmatprep.subr.bf16.mxu1 %v6561_v52 }
 0x2d7   : > { %4046 = vmatpush1.bf16.msra.mxu1 %v6559_v54  ;;  %v5618_v54 = vld [vmem:[%s8431_s4] ss:$0 sm:$0xff] }
 0x2d8   : > { %4313 = vmatprep.subr.bf16.mxu1 %v6564_v55 }
 0x2da   : > { %4064 = vmatmul.mubr.bf16.vlgmr.msra.gmra.mrb[40].mxu1 %v7700_v61  ;;  %v6573_v61 = vld [vmem:[%s8430_s3 + $0x46c] ss:$16 sps:$4 sm:$0xff]  }
 0x2db   : > { %4314 = vmatpush1.bf16.msra.mxu1 %v6562_v57  ;;  %4073 = vmatprep.mubr.bf16.mxu1 %v6733_v0 }
 0x2dc   : > { %4315 = vmatprep.subr.bf16.mxu1 %v6567_v58 }
 0x2df   : > { %4316 = vmatpush1.bf16.msra.mxu1 %v6565_v59 }
 0x2e0   : > { %4317 = vmatprep.subr.bf16.mxu1 %v6570_v60 }
 0x2e2   : > { %4074 = vmatmul.mubr.bf16.gmra.mrb[44].mxu1 %v7739_v56  ;;  %v6579_v56 = vld [vmem:[%s8430_s3 + $0x4ac] ss:$16 sps:$4 sm:$0xff]  }
 0x2e3   : > { %4318 = vmatpush1.bf16.msra.mxu1 %v6568_v63  ;;  %4345 = vmatprep.mubr.bf16.mxu1 %v6733_v0 }
 0x2e4   : > { %4319 = vmatprep.subr.bf16.mxu1 %v6573_v61 }
 0x2e7   : > { %4320 = vmatpush1.bf16.msra.mxu1 %v6571_v6 }
 0x2e8   : > { %4321 = vmatprep.subr.bf16.mxu1 %v6576_v9 }
 0x2eb   : > { %4322 = vmatpush1.bf16.msra.mxu1 %v6574_v14 }
 0x2ec   : > { %4323 = vmatprep.subr.bf16.mxu1 %v6579_v56 }
 0x2ef   : > { %4324 = vmatpush1.bf16.msra.mxu1 %v6577_v12 }
 0x2f0   : > { %4325 = vmatprep.subr.bf16.mxu1 %v6582_v17  ;;  %v6594_v17 = vld [vmem:[#allocation2 + $0xc0] sm:$0xff]  }
 0x2f3   : > { %4326 = vmatpush1.bf16.msra.mxu1 %v6580_v26 }
 0x2f4   : > { %4327 = vmatprep.subr.bf16.mxu1 %v6585_v38 }
 0x2f7   : > { %4328 = vmatpush1.bf16.msra.mxu1 %v6583_v44 }
 0x2f8   : > { %5790 = vmatprep.subr.bf16.mxu1 %v6734_v29 }
 0x2fa   : > { %4346 = vmatmul.mubr.bf16.vlgmr.msra.gmra.mrb[40].mxu1 %v7708_v20  ;;  %v6587_v20 = vld [vmem:[#allocation2 + $0x48] sm:$0xff]  }
 0x2fb   : > { %4355 = vmatprep.mubr.bf16.mxu1 %v6733_v0  ;;  %5713 = vmatpush3.bf16.msra.mxu0 %v6587_v20  ;;  %v6588_v0 = vld [vmem:[#allocation2 + $0x50] sm:$0xff]   ;;  %v6601_v20 = vld [vmem:[#allocation2 + $0xf8] sm:$0xff]  }
 0x2fc   : > { %5714 = vmatprep.subr.bf16.mxu0 %v6734_v29  ;;  %5791 = vmatpush3.bf16.msra.mxu1 %v6618_v41 }
 0x2fd   : > { %5792 = vmatprep.subr.bf16.mxu1 %v6734_v29 }
 0x2ff   : > { %5715 = vmatpush3.bf16.msra.mxu0 %v6588_v0 }
 0x300   : > { %5716 = vmatprep.subr.bf16.mxu0 %v6734_v29  ;;  %5793 = vmatpush3.bf16.msra.mxu1 %v6619_v43 }
 0x301   : > { %5794 = vmatprep.subr.bf16.mxu1 %v6734_v29 }
 0x302   : > { %4356 = vmatmul.mubr.bf16.gmra.mrb[44].mxu1 %v7744_v48  ;;  %v6589_v48 = vld [vmem:[#allocation2 + $0x58] sm:$0xff]  }
 0x303   : > { %5717 = vmatpush3.bf16.msra.mxu0 %v6589_v48  ;;  %5806 = vmatprep.mubr.msk.bf16.mxu1 %vm6735_vm2, %v6734_v29  ;;  %v6602_v48 = vld [vmem:[#allocation2] sm:$0xff]  }
 0x304   : > { %5718 = vmatprep.subr.bf16.mxu0 %v6734_v29  ;;  %5795 = vmatpush3.bf16.msra.mxu1 %v6620_v42 }
 0x305   : > { %5796 = vmatprep.subr.bf16.mxu1 %v6734_v29 }
 0x307   : > { %5719 = vmatpush3.bf16.msra.mxu0 %v6590_v34 }
 0x308   : > { %5720 = vmatprep.subr.bf16.mxu0 %v6734_v29  ;;  %5797 = vmatpush3.bf16.msra.mxu1 %v6621_v45 }
 0x309   : > { %5798 = vmatprep.subr.bf16.mxu1 %v6734_v29 }
 0x30b   : > { %5721 = vmatpush3.bf16.msra.mxu0 %v6591_v37  ;;  %v6603_v37 = vld [vmem:[#allocation2 + $0x8] sm:$0xff]  }
 0x30c   : > { %5722 = vmatprep.subr.bf16.mxu0 %v6734_v29  ;;  %5799 = vmatpush3.bf16.msra.mxu1 %v6622_v32 }
 0x30d   : > { %v2810_v53 = vpop.f32.mrb[32].mxu1  ;;  %5800 = vmatprep.subr.bf16.mxu1 %v6734_v29 }
 0x30e   : > { %v2812_v62 = vpop.f32.mrb[33].mxu1 }
 0x30f   : > { %v2814_v47 = vpop.f32.mrb[34].mxu1  ;;  %5723 = vmatpush3.bf16.msra.mxu0 %v6592_v7  ;;  %v6604_v7 = vld [vmem:[#allocation2 + $0x10] sm:$0xff]  }
 0x310   : > { %v2816_v4 = vpop.f32.mrb[35].mxu1  ;;  %5724 = vmatprep.subr.bf16.mxu0 %v6734_v29  ;;  %5801 = vmatpush3.bf16.msra.mxu1 %v6623_v49 }
 0x311   : > { %5802 = vmatprep.subr.bf16.mxu1 %v6734_v29 }
 0x313   : > { %5725 = vmatpush3.bf16.msra.mxu0 %v6593_v1  ;;  %v6605_v1 = vld [vmem:[#allocation2 + $0x18] sm:$0xff]  }
 0x314   : > { %5730 = vmatprep.subr.bf16.mxu0 %v6734_v29 }
 0x315   : > { %v2820_v16 = vpop.f32.mrb[36].mxu1 }
 0x316   : > { %v2822_v19 = vpop.f32.mrb[37].mxu1 }
 0x317   : > { %v2824_v27 = vpop.f32.mrb[38].mxu1 }
 0x318   : > { %v2826_v18 = vpop.f32.mrb[39].mxu1 }
 0x393   : > { %v4294_v21 = vpop.f32.mrb[24].mxu0 }
 0x394   : > { %v5822_v5 = vadd.f32 %v4294_v21, %v2810_v53  ;;  %v4296_v15 = vpop.f32.mrb[25].mxu0  ;;  %v6606_v21 = vld [vmem:[#allocation2 + $0x20] sm:$0xff]  }
 0x395   : > { %v5823_v2 = vadd.f32 %v4296_v15, %v2812_v62  ;;  %v4298_v3 = vpop.f32.mrb[26].mxu0  ;;  %v6608_v15 = vld [vmem:[#allocation2 + $0x30] sm:$0xff]  }
 0x396   : > { %v5824_v8 = vadd.f32 %v4298_v3, %v2814_v47  ;;  %v4300_v10 = vpop.f32.mrb[27].mxu0  ;;  %v6595_v47 = vld [vmem:[#allocation2 + $0xc8] sm:$0xff]  }
 0x397   : > { %v4382_v13 = vmax.f32 %v5822_v5, %v5823_v2  ;;  %v5825_v22 = vadd.f32 %v4300_v10, %v2816_v4  ;;  %v6596_v4 = vld [vmem:[#allocation2 + $0xd0] sm:$0xff]   ;;  %v6607_v5 = vld [vmem:[#allocation2 + $0x28] sm:$0xff]   ;;  %v6609_v2 = vld [vmem:[#allocation2 + $0x38] sm:$0xff]  }
 0x399   : > { %v4383_v23 = vmax.f32 %v5824_v8, %v5825_v22  ;;  %v6610_v8 = vld [vmem:[#allocation2 + $0x80] sm:$0xff]   ;;  %v6612_v22 = vld [vmem:[#allocation2 + $0x90] sm:$0xff]  }
 0x39b   : > { %v4304_v24 = vpop.f32.mrb[28].mxu0 }
 0x39c   : > { %v5826_v30 = vadd.f32 %v4304_v24, %v2820_v16  ;;  %v4306_v31 = vpop.f32.mrb[29].mxu0  ;;  %v6597_v16 = vld [vmem:[#allocation2 + $0xd8] sm:$0xff]   ;;  %v6614_v24 = vld [vmem:[#allocation2 + $0xa0] sm:$0xff]  }
 0x39d   : > { %v5827_v28 = vadd.f32 %v4306_v31, %v2822_v19  ;;  %v4308_v33 = vpop.f32.mrb[30].mxu0  ;;  %v6598_v19 = vld [vmem:[#allocation2 + $0xe0] sm:$0xff]   ;;  %v6616_v31 = vld [vmem:[#allocation2 + $0xb0] sm:$0xff]  }
 0x39e   : > { %v5828_v36 = vadd.f32 %v4308_v33, %v2824_v27  ;;  %v4310_v11 = vpop.f32.mrb[31].mxu0  ;;  %v6599_v27 = vld [vmem:[#allocation2 + $0xe8] sm:$0xff]  }
 0x39f   : > { %v4384_v35 = vmax.f32 %v5826_v30, %v5827_v28  ;;  %v5829_v39 = vadd.f32 %v4310_v11, %v2826_v18  ;;  %v6600_v18 = vld [vmem:[#allocation2 + $0xf0] sm:$0xff]   ;;  %v6615_v30 = vld [vmem:[#allocation2 + $0xa8] sm:$0xff]   ;;  %v6617_v28 = vld [vmem:[#allocation2 + $0xb8] sm:$0xff]  }
 0x3a0   : > { %v6624_v11 = vld [vmem:[%s8434_s7 + $0x30] sm:$0xff]  }
 0x3a1   : > { %v4385_v40 = vmax.f32 %v5828_v36, %v5829_v39  ;;  %5803 = vmatpush3.bf16.msra.mxu1 %v6624_v11  ;;  %v5643_v39 = vld [vmem:[%s8433_s6] ss:$0 sm:$0xff] }
 0x3a2   : > { %5804 = vmatprep.subr.bf16.mxu1 %v6734_v29 }
 0x3cd   : > { %v4347_v46 = vpop.f32.mrb[40].mxu1 }
 0x3ce   : > { %v4349_v50 = vpop.f32.mrb[41].mxu1 }
 0x3cf   : > { %v4386_v51 = vmax.f32 %v4347_v46, %v4349_v50  ;;  %v4351_v52 = vpop.f32.mrb[42].mxu1 }
 0x3d0   : > { %v4353_v55 = vpop.f32.mrb[43].mxu1 }
 0x3d1   : > { %v4390_v57 = vmax.f32 %v4382_v13, %v4386_v51  ;;  %v4387_v58 = vmax.f32 %v4351_v52, %v4353_v55  ;;  %v6611_v13 = vld [vmem:[#allocation2 + $0x88] sm:$0xff]  }
 0x3d3   : > { %v8332_v59 = vadd.f32 %v5618_v54, %v4390_v57  ;;  %v4391_v60 = vmax.f32 %v4383_v23, %v4387_v58  ;;  %v6613_v23 = vld [vmem:[#allocation2 + $0x98] sm:$0xff]  }
 0x3d5   : > { %v4402_v63 = vadd.f32 %v5618_v54, %v4391_v60  ;;  %v4357_v61 = vpop.f32.mrb[44].mxu1  ;;  %v4405_v3 = vmax.f32 %v8332_v59, 0.0 }
 0x3d6   : > { %v4359_v6 = vpop.f32.mrb[45].mxu1 }
 0x3d7   : > { %v4406_v9 = vmax.f32 %v4402_v63, 0.0  ;;  %v4388_v14 = vmax.f32 %v4357_v61, %v4359_v6  ;;  %v4361_v56 = vpop.f32.mrb[46].mxu1  ;;  %v4409_v10 = vpack.c.bf16 %v4405_v3, %v4405_v3 }
 0x3d8   : > { %v4363_v12 = vpop.f32.mrb[47].mxu1 }
 0x3d9   : > { %v4426_v26 = vpack.c.bf16 %v4406_v9, %v4406_v9  ;;  %v4392_v38 = vmax.f32 %v4384_v35, %v4388_v14  ;;  %v4389_v44 = vmax.f32 %v4361_v56, %v4363_v12  ;;  %v6625_v35 = vld [vmem:[%s8434_s7 + $0x38] sm:$0xff]  }
 0x3da   : > { %5805 = vmatpush3.bf16.msra.mxu1 %v6625_v35 }
 0x3db   : > { %v8334_v53 = vadd.f32 %v5618_v54, %v4392_v38  ;;  %v4393_v62 = vmax.f32 %v4385_v40, %v4389_v44  ;;  %5727 = vmatmul.mubr.bf16.vlgmr.msra.gmra.mrb[32].mxu0 %v4426_v26 }
 0x3dc   : > { %5731 = vmatpush3.bf16.msra.mxu0 %v6594_v17  ;;  %5746 = vmatprep.mubr.msk.bf16.mxu0 %vm6735_vm2, %v6734_v29 }
 0x3dd   : > { %5732 = vmatprep.subr.bf16.mxu0 %v6734_v29  ;;  %v4404_v25 = vadd.f32 %v5618_v54, %v4393_v62  ;;  %v4407_v33 = vmax.f32 %v8334_v53, 0.0 }
 0x3df   : > { %v4408_v0 = vmax.f32 %v4404_v25, 0.0  ;;  %v4532_v36 = vpack.c.bf16 %v4407_v33, %v4407_v33 }
 0x3e0   : > { %5733 = vmatpush3.bf16.msra.mxu0 %v6595_v47 }
 0x3e1   : > { %5734 = vmatprep.subr.bf16.mxu0 %v6734_v29  ;;  %v4550_v34 = vpack.c.bf16 %v4408_v0, %v4408_v0 }
 0x3e4   : > { %5735 = vmatpush3.bf16.msra.mxu0 %v6596_v4 }
 0x3e5   : > { %5736 = vmatprep.subr.bf16.mxu0 %v6734_v29 }
 0x3e8   : > { %5737 = vmatpush3.bf16.msra.mxu0 %v6597_v16 }
 0x3e9   : > { %5738 = vmatprep.subr.bf16.mxu0 %v6734_v29 }
 0x3ec   : > { %5739 = vmatpush3.bf16.msra.mxu0 %v6598_v19 }
 0x3ed   : > { %5740 = vmatprep.subr.bf16.mxu0 %v6734_v29 }
 0x3f0   : > { %5741 = vmatpush3.bf16.msra.mxu0 %v6599_v27 }
 0x3f1   : > { %5742 = vmatprep.subr.bf16.mxu0 %v6734_v29 }
 0x3f4   : > { %5743 = vmatpush3.bf16.msra.mxu0 %v6600_v18 }
 0x3f5   : > { %5744 = vmatprep.subr.bf16.mxu0 %v6734_v29 }
 0x3f8   : > { %5745 = vmatpush3.bf16.msra.mxu0 %v6601_v20 }
 0x3f9   : > { %5750 = vmatprep.subr.bf16.mxu0 %v6734_v29 }
 0x3fb   : > { %5747 = vmatmul.mubr.bf16.vlgmr.msra.gmra.mrb[32].mxu0 %v4550_v34 }
 0x3fc   : > { %5751 = vmatpush3.bf16.msra.mxu0 %v6602_v48  ;;  %5766 = vmatprep.mubr.msk.bf16.mxu0 %vm6735_vm2, %v6734_v29 }
 0x3fd   : > { %5752 = vmatprep.subr.bf16.mxu0 %v6734_v29 }
 0x400   : > { %5753 = vmatpush3.bf16.msra.mxu0 %v6603_v37 }
 0x401   : > { %5754 = vmatprep.subr.bf16.mxu0 %v6734_v29 }
 0x404   : > { %5755 = vmatpush3.bf16.msra.mxu0 %v6604_v7 }
 0x405   : > { %5756 = vmatprep.subr.bf16.mxu0 %v6734_v29 }
 0x408   : > { %5757 = vmatpush3.bf16.msra.mxu0 %v6605_v1 }
 0x409   : > { %5758 = vmatprep.subr.bf16.mxu0 %v6734_v29 }
 0x40c   : > { %5759 = vmatpush3.bf16.msra.mxu0 %v6606_v21 }
 0x40d   : > { %5760 = vmatprep.subr.bf16.mxu0 %v6734_v29 }
 0x410   : > { %5761 = vmatpush3.bf16.msra.mxu0 %v6607_v5 }
 0x411   : > { %5762 = vmatprep.subr.bf16.mxu0 %v6734_v29 }
 0x414   : > { %5763 = vmatpush3.bf16.msra.mxu0 %v6608_v15 }
 0x415   : > { %5764 = vmatprep.subr.bf16.mxu0 %v6734_v29 }
 0x418   : > { %5765 = vmatpush3.bf16.msra.mxu0 %v6609_v2 }
 0x419   : > { %5770 = vmatprep.subr.bf16.mxu0 %v6734_v29 }
 0x41b   : > { %5767 = vmatmul.mubr.bf16.vlgmr.msra.gmra.mrb[32].mxu0 %v4409_v10 }
 0x41c   : > { %5771 = vmatpush3.bf16.msra.mxu0 %v6610_v8  ;;  %5786 = vmatprep.mubr.msk.bf16.mxu0 %vm6735_vm2, %v6734_v29 }
 0x41d   : > { %5772 = vmatprep.subr.bf16.mxu0 %v6734_v29 }
 0x420   : > { %5773 = vmatpush3.bf16.msra.mxu0 %v6611_v13 }
 0x421   : > { %5774 = vmatprep.subr.bf16.mxu0 %v6734_v29 }
 0x424   : > { %5775 = vmatpush3.bf16.msra.mxu0 %v6612_v22 }
 0x425   : > { %5776 = vmatprep.subr.bf16.mxu0 %v6734_v29 }
 0x428   : > { %5777 = vmatpush3.bf16.msra.mxu0 %v6613_v23 }
 0x429   : > { %5778 = vmatprep.subr.bf16.mxu0 %v6734_v29 }
 0x42c   : > { %5779 = vmatpush3.bf16.msra.mxu0 %v6614_v24 }
 0x42d   : > { %5780 = vmatprep.subr.bf16.mxu0 %v6734_v29 }
 0x430   : > { %5781 = vmatpush3.bf16.msra.mxu0 %v6615_v30 }
 0x431   : > { %5782 = vmatprep.subr.bf16.mxu0 %v6734_v29 }
 0x434   : > { %5783 = vmatpush3.bf16.msra.mxu0 %v6616_v31 }
 0x435   : > { %5784 = vmatprep.subr.bf16.mxu0 %v6734_v29  ;;  %v5652_v29 = vld [vmem:[%s8435_s8] ss:$0 sm:$0xff] }
 0x438   : > { %5785 = vmatpush3.bf16.msra.mxu0 %v6617_v28 }
 0x43b   : > { %5787 = vmatmul.mubr.bf16.vlgmr.msra.gmra.mrb[32].mxu0 %v4532_v36 }
 0x50e   : > { %v4834_v40 = vpop.f32.mrb[32].mxu0 }
 0x50f   : > { %v5830_v41 = vadd.f32 %v5643_v39, %v4834_v40  ;;  %v5788_v43 = vpop.f32.mrb[33].mxu0 }
 0x510   : > { %v4837_v42 = vpop.f32.mrb[34].mxu0 }
 0x511   : > { %v4841_v45 = vmax.f32 %v5830_v41, 0.0  ;;  %v5789_v32 = vpop.f32.mrb[35].mxu0 }
 0x513   : > { %v4842_v46 = vpack.c.bf16 %v4841_v45, %v4841_v45 }
 0x515   : > { %5807 = vmatmul.mubr.bf16.vlgmr.msra.gmra.mrb[48].mxu1 %v4842_v46 }
 0x5e8   : > { %v4948_v49 = vpop.f32.mrb[48].mxu1 }
 0x5e9   : > { %v4949_v50 = vadd.f32 %v5652_v29, %v4948_v49  ;;  %v5808_v51 = vpop.f32.mrb[49].mxu1 }
 0x5ea   : > { %v4951_v52 = vpop.f32.mrb[50].mxu1 }
 0x5eb   : > { %4954 = vmax.xlane.f32.xlu0 %v4949_v50  ;;  %v5809_v54 = vpop.f32.mrb[51].mxu1 }
 0x678   : > { %v4955_v55 = vpop.xlane.xlu0 %4954 }
 0x679   : > { %v4956_v57 = vsub.f32 %v4949_v50, %v4955_v55 }
 0x67b   : > { %v4957_v58 = vmul.f32 1.442695, %v4956_v57 }
 0x67d   : > { %6626 = vpow2.f32 %v4957_v58 }
 0x687   : > { %v6627_v59 = vpop.eup %6626 }
 0x688   : > { %4959 = vadd.xlane.f32.xlu0 %v6627_v59 }
 0x715   : > { %v4960_v60 = vpop.xlane.xlu0 %4959 }
 0x716   : > { %6628 = vrcp.f32 %v4960_v60 }
 0x720   : > { %v6629_v63 = vpop.eup %6628 }
 0x721   : > { %v4962_v61 = vmul.f32 %v6629_v63, %v6627_v59 }
 0x723   : > { %4963 = vst [vmem:[%s341_s27] sm:$0xff] %v4962_v61 }
 0x724   : > { %6675 = shalt.err (!%p6672_p7)
}
 0x725   : > { %s6676_s16 = scalar_lea.hbm %s8385_s21, 128  ;;  %s6680_s27 = scalar_lea.hbm %s8436_s9, 256 }
 0x726   : > { %p6677_p8 = scmp.ne.s32.totalorder %s8385_s21, %s6676_s16  ;;  %p6681_p1 = scmp.lt.u32.totalorder %s8385_s21, %s8436_s9 }
 0x727   : > { %p6682_p0 = scmp.lt.u32.totalorder %s6680_s27, %s6676_s16  ;;  %p6684_p6 = scmp.lt.u32.totalorder %s6676_s16, %s8385_s21 }
 0x728   : > { %p6678_p11 = pnand %p6677_p8, %p8456_p9 }
 0x729   : > { %p6683_p5 = por %p6682_p0, %p6681_p1 }
 0x72a   : > { %p6679_p13 = pneg %p6678_p11 }
 0x72b   : > { %p6685_p10 = por %p6684_p6, %p6683_p5 }
 0x72d   : > { %p6686_p12 = pnand %p6685_p10, %p6679_p13 }
 0x72f   : > { %6689 = shalt.err (!%p6686_p12)
}
 0x730   : > { %6151 = dma.vmem_to_hbm [thread:$0]  (%p8456_p9), %s8387_s24, 128, %s8385_s21, %s4965_s14  }
 0x731 PF: > { %p6163_p2 = scmp.ge.s32.totalorder %s6728_s12, 2  ;;  %s4990_s17 = sand.u32 1, %s6716_s30  }
 0x732   : > { %p8457_p3 = scmp.ne.s32.totalorder %s8444_s20, 0  ;;  %s4991_s13 = scalar_lea.sflag [#allocation4], %s4990_s17 }
 0x734   : > { %p6158_p4 = pnand %p6163_p2, %p8457_p3 }
 0x736   : > { %6711 = dma.done.wait (!%p6158_p4), %s4991_s13, 128  }
 0x737   : > { %6713 = vsyncadd (!%p6158_p4), %s4991_s13, 4294967168  ;;  %p20_p7 = scmp.ge.s32.totalorder %s6812_s15, 4   ;;  %s8458_s30 = smov %s6720_s10 }
 0x738   : > { %s8459_s10 = smov %s6724_s11  ;;  %s8460_s11 = smov %s6823_s18 }
 0x739   : > { %s8461_s12 = smov %s6812_s15  ;;  %22 = sbr.rel (!%p20_p7) target bundleno = 4 (0x4), region = 109 }
 0x740   :  { %4996 = vsyncpa [#allocation3], 1 }
 0x741   :  { %4998 = vsyncpa [#allocation3 + $0x1], 1 }
 0x742   :  { %4999 = vsyncpa [#allocation4], 1 }
 0x743   :  { %5001 = vsyncpa [#allocation4 + $0x1], 1 }

</bundles_post_ra>
